<compile_context>
chip_gen: v5e
topology: v5e:2x2
jax: 0.10.0
libtpu: 0.0.40
codegen_flags: <defaults>
</compile_context>

<pallas_src>
import math
from functools import partial

import jax
import jax.numpy as jnp
from jax import lax
from jax.experimental import pallas as pl
from jax.experimental.pallas import tpu as pltpu

# ----------------------------- configuration --------------------------------
DIM = 32          # channel dim of the block
HEADS = 4
DIM_HEAD = 16
HIDDEN = HEADS * DIM_HEAD      # 64
B = 2
SEQ = 32
EPS = 1e-12       # F.normalize default eps


# ------------------------------ Pallas kernel -------------------------------
def linear_attention_kernel(x_ref, wqkv_ref, wout_ref, bout_ref, g_ref, o_ref,
                            *, heads, dim_head, scale, eps):
    """One batch element, fully fused LinearAttention forward.

    x_ref    : (1, N, C)   channels-last input
    wqkv_ref : (C, 3*H*Dh) to_qkv conv1x1 weight (transposed, no bias)
    wout_ref : (H*Dh, C)   to_out conv1x1 weight (transposed)
    bout_ref : (1, C)      to_out conv1x1 bias
    g_ref    : (1, C)      RMSNorm gain
    o_ref    : (1, N, C)   channels-last output
    """
    hidden = heads * dim_head
    x = x_ref[0]                                                    # (N, C)

    # ---- to_qkv: 1x1 conv == matmul; lane-dense (N, 3*hidden) output ----
    qkv = jnp.dot(x, wqkv_ref[...], preferred_element_type=jnp.float32)
    q = qkv[:, :hidden]                                             # (N, H*Dh)
    k = qkv[:, hidden:2 * hidden]
    v = qkv[:, 2 * hidden:]

    # ---- k: softmax over the sequence axis (rows), per channel column ----
    k = k - jnp.max(k, axis=0, keepdims=True)
    ek = jnp.exp(k)
    k = ek * pl.reciprocal(jnp.sum(ek, axis=0, keepdims=True), approx=False)

    # ---- per-head: q softmax over dim_head, then the two tiny einsums ----
    outs = []
    for h in range(heads):                       # static unrolled loop, heads=4
        sl = slice(h * dim_head, (h + 1) * dim_head)
        qh = q[:, sl]                            # (N, Dh)  [n, c]
        kh = k[:, sl]
        vh = v[:, sl]

        qh = qh - jnp.max(qh, axis=-1, keepdims=True)
        eq = jnp.exp(qh)
        qh = eq * pl.reciprocal(jnp.sum(eq, axis=-1, keepdims=True), approx=False)
        qh = qh * scale

        # context[d, e] = sum_n k[n, d] * v[n, e]
        ctx = lax.dot_general(kh, vh, (((0,), (0,)), ((), ())),
                              preferred_element_type=jnp.float32)   # (Dh, Dh)
        # out[n, e] = sum_d q[n, d] * context[d, e]
        outs.append(jnp.dot(qh, ctx, preferred_element_type=jnp.float32))  # (N, Dh)

    out = jnp.concatenate(outs, axis=-1)                            # (N, H*Dh)

    # ---- to_out: 1x1 conv + bias, then RMSNorm over channels ----
    y = jnp.dot(out, wout_ref[...], preferred_element_type=jnp.float32) + bout_ref[...]
    ss = jnp.sum(y * y, axis=-1, keepdims=True)
    inv = lax.rsqrt(jnp.maximum(ss, eps * eps))                     # = 1/max(||y||, eps)
    o_ref[0] = y * inv * g_ref[...] * float(y.shape[-1]) ** 0.5


# ------------------------------ wrapper --------------------------------------
def linear_attention(params, x_ncl, *, heads=HEADS, dim_head=DIM_HEAD):
    """x_ncl: (B, C, N) NCL like the PyTorch module; returns (B, C, N)."""
    Bz, C, N = x_ncl.shape
    hidden = heads * dim_head

    x_lc = jnp.transpose(x_ncl, (0, 2, 1))                          # (B, N, C)
    wqkv = jnp.transpose(params['to_qkv_w'][:, :, 0])               # (C, 3*hidden)
    wout = jnp.transpose(params['to_out_w'][:, :, 0])               # (hidden, C)
    bout = params['to_out_b'].reshape(1, C)
    g = params['g'].reshape(1, C)

    kernel = partial(linear_attention_kernel, heads=heads, dim_head=dim_head,
                     scale=dim_head ** -0.5, eps=EPS)

    y_lc = pl.pallas_call(
        kernel,
        out_shape=jax.ShapeDtypeStruct((Bz, N, C), jnp.float32),
        grid=(Bz,),
        in_specs=[
            pl.BlockSpec((1, N, C), lambda b: (b, 0, 0)),           # x (per batch)
            pl.BlockSpec((C, 3 * hidden), lambda b: (0, 0)),        # w_qkv (shared)
            pl.BlockSpec((hidden, C), lambda b: (0, 0)),            # w_out (shared)
            pl.BlockSpec((1, C), lambda b: (0, 0)),                 # b_out
            pl.BlockSpec((1, C), lambda b: (0, 0)),                 # g
        ],
        out_specs=pl.BlockSpec((1, N, C), lambda b: (b, 0, 0)),
        compiler_params=pltpu.CompilerParams(
            dimension_semantics=("parallel",)),                     # batch -> both TCs on v7x
    )(x_lc, wqkv, wout, bout, g)

    return jnp.transpose(y_lc, (0, 2, 1))                           # back to NCL


# --------------------------- pure-JAX reference -------------------------------
def linear_attention_ref(params, x, *, heads=HEADS, dim_head=DIM_HEAD):
    """Mirrors the PyTorch module exactly (f32, HIGHEST precision)."""
    Bz, C, N = x.shape
    hidden = heads * dim_head
    hp = jax.lax.Precision.HIGHEST

    w_qkv = params['to_qkv_w'][:, :, 0]                             # (3*hidden, C)
    qkv = jnp.einsum('oc,bcn->bon', w_qkv, x, precision=hp)
    q, k, v = jnp.split(qkv, 3, axis=1)
    reshape_heads = lambda t: t.reshape(Bz, heads, dim_head, N)
    q, k, v = map(reshape_heads, (q, k, v))

    q = jax.nn.softmax(q, axis=-2)
    k = jax.nn.softmax(k, axis=-1)
    q = q * dim_head ** -0.5

    context = jnp.einsum('bhdn,bhen->bhde', k, v, precision=hp)
    out = jnp.einsum('bhde,bhdn->bhen', context, q, precision=hp)
    out = out.reshape(Bz, hidden, N)

    w_out = params['to_out_w'][:, :, 0]                             # (C, hidden)
    y = jnp.einsum('oh,bhn->bon', w_out, out, precision=hp) + params['to_out_b'][None, :, None]

    norm = jnp.sqrt(jnp.sum(y * y, axis=1, keepdims=True))
    y = y / jnp.maximum(norm, EPS)
    return y * params['g'] * float(y.shape[1]) ** 0.5


# ------------------------------ parameters ------------------------------------
def make_params(key, dim=DIM, heads=HEADS, dim_head=DIM_HEAD):
    hidden = heads * dim_head
    k1, k2, k3 = jax.random.split(key, 3)
    bq = 1.0 / math.sqrt(dim)        # torch Conv1d default init bound (kernel_size=1)
    bo = 1.0 / math.sqrt(hidden)
    return {
        'to_qkv_w': jax.random.uniform(k1, (hidden * 3, dim, 1), jnp.float32, -bq, bq),
        'to_out_w': jax.random.uniform(k2, (dim, hidden, 1), jnp.float32, -bo, bo),
        'to_out_b': jax.random.uniform(k3, (dim,), jnp.float32, -bo, bo),
        'g': jnp.ones((1, dim, 1), jnp.float32),                    # RMSNorm init: ones
    }


# ------------------------------ demo -------------------------------------------
if __name__ == "__main__":
    key = jax.random.PRNGKey(0)
    kp, kx = jax.random.split(key)
    params = make_params(kp)
    x = jax.random.normal(kx, (B, DIM, SEQ), jnp.float32)           # NCL like PyTorch

    fwd = jax.jit(lambda xx: linear_attention(params, xx))
    y = fwd(x)
    jax.block_until_ready(y)

    assert y.shape == (B, DIM, SEQ), y.shape
    assert bool(jnp.all(jnp.isfinite(y)))

    y_ref = linear_attention_ref(params, x)
    err = float(jnp.max(jnp.abs(y - y_ref)))
    assert err < 5e-3, f"mismatch vs reference: max abs err = {err}"

    print("KERNEL_OK")
</pallas_src>

<mosaic_0001>
module attributes {stable_mosaic.version = 11 : i64} {
  func.func @linear_attention_kernel(%arg0: i32, %arg1: memref<1x32x32xf32, #tpu.memory_space<vmem>>, %arg2: memref<32x192xf32, #tpu.memory_space<vmem>>, %arg3: memref<64x32xf32, #tpu.memory_space<vmem>>, %arg4: memref<1x32xf32, #tpu.memory_space<vmem>>, %arg5: memref<1x32xf32, #tpu.memory_space<vmem>>, %arg6: memref<1x32x32xf32, #tpu.memory_space<vmem>>) attributes {dimension_semantics = [#tpu.dimension_semantics<parallel>], iteration_bounds = array<i64: 2>, scalar_prefetch = 0 : i64, scratch_operands = 0 : i64, tpu.core_type = #tpu.core_type<tc>, window_params = [{transform_indices = @transform_0, window_bounds = array<i64: 1, 32, 32>}, {pipeline_mode = #tpu.pipeline_mode<synchronous>, transform_indices = @transform_1, window_bounds = array<i64: 32, 192>}, {pipeline_mode = #tpu.pipeline_mode<synchronous>, transform_indices = @transform_2, window_bounds = array<i64: 64, 32>}, {pipeline_mode = #tpu.pipeline_mode<synchronous>, transform_indices = @transform_3, window_bounds = array<i64: 1, 32>}, {pipeline_mode = #tpu.pipeline_mode<synchronous>, transform_indices = @transform_4, window_bounds = array<i64: 1, 32>}, {transform_indices = @transform_5, window_bounds = array<i64: 1, 32, 32>}]} {
    %c0 = arith.constant 0 : index
    %c0_0 = arith.constant 0 : index
    %c0_1 = arith.constant 0 : index
    %0 = vector.load %arg1[%c0, %c0_0, %c0_1] : memref<1x32x32xf32, #tpu.memory_space<vmem>>, vector<1x32x32xf32>
    %1 = vector.shape_cast %0 : vector<1x32x32xf32> to vector<32x32xf32>
    %c0_2 = arith.constant 0 : index
    %c0_3 = arith.constant 0 : index
    %2 = vector.load %arg2[%c0_2, %c0_3] : memref<32x192xf32, #tpu.memory_space<vmem>>, vector<32x192xf32>
    %cst = arith.constant dense<0.000000e+00> : vector<32x192xf32>
    %3 = tpu.matmul %1, %2, %cst {dimension_numbers = #tpu.dot_dimension_numbers<[1], [0], [0], [1], [0, 0, 1, 1], [], []>} : vector<32x32xf32>, vector<32x192xf32>, vector<32x192xf32> -> vector<32x192xf32>
    %4 = vector.extract_strided_slice %3 {offsets = [0, 0], sizes = [32, 64], strides = [1, 1]} : vector<32x192xf32> to vector<32x64xf32>
    %5 = vector.extract_strided_slice %3 {offsets = [0, 64], sizes = [32, 64], strides = [1, 1]} : vector<32x192xf32> to vector<32x64xf32>
    %6 = vector.extract_strided_slice %3 {offsets = [0, 128], sizes = [32, 64], strides = [1, 1]} : vector<32x192xf32> to vector<32x64xf32>
    %cst_4 = arith.constant dense<0xFF800000> : vector<64xf32>
    %7 = vector.multi_reduction <maximumf>, %5, %cst_4 [0] : vector<32x64xf32> to vector<64xf32>
    %8 = vector.shape_cast %7 : vector<64xf32> to vector<1x64xf32>
    %9 = vector.broadcast %8 : vector<1x64xf32> to vector<32x64xf32>
    %10 = arith.subf %5, %9 : vector<32x64xf32>
    %11 = math.exp %10 : vector<32x64xf32>
    %cst_5 = arith.constant dense<0.000000e+00> : vector<64xf32>
    %12 = vector.multi_reduction <add>, %11, %cst_5 [0] : vector<32x64xf32> to vector<64xf32>
    %13 = vector.shape_cast %12 : vector<64xf32> to vector<1x64xf32>
    %14 = tpu.reciprocal %13 : vector<1x64xf32> -> vector<1x64xf32>
    %15 = vector.broadcast %14 : vector<1x64xf32> to vector<32x64xf32>
    %16 = arith.mulf %11, %15 : vector<32x64xf32>
    %17 = vector.extract_strided_slice %4 {offsets = [0, 0], sizes = [32, 16], strides = [1, 1]} : vector<32x64xf32> to vector<32x16xf32>
    %18 = vector.extract_strided_slice %16 {offsets = [0, 0], sizes = [32, 16], strides = [1, 1]} : vector<32x64xf32> to vector<32x16xf32>
    %19 = vector.extract_strided_slice %6 {offsets = [0, 0], sizes = [32, 16], strides = [1, 1]} : vector<32x64xf32> to vector<32x16xf32>
    %cst_6 = arith.constant dense<0xFF800000> : vector<32xf32>
    %20 = vector.multi_reduction <maximumf>, %17, %cst_6 [1] : vector<32x16xf32> to vector<32xf32>
    %21 = vector.shape_cast %20 : vector<32xf32> to vector<32x1xf32>
    %22 = vector.broadcast %21 : vector<32x1xf32> to vector<32x16xf32>
    %23 = arith.subf %17, %22 : vector<32x16xf32>
    %24 = math.exp %23 : vector<32x16xf32>
    %cst_7 = arith.constant dense<0.000000e+00> : vector<32xf32>
    %25 = vector.multi_reduction <add>, %24, %cst_7 [1] : vector<32x16xf32> to vector<32xf32>
    %26 = vector.shape_cast %25 : vector<32xf32> to vector<32x1xf32>
    %27 = tpu.reciprocal %26 : vector<32x1xf32> -> vector<32x1xf32>
    %28 = vector.broadcast %27 : vector<32x1xf32> to vector<32x16xf32>
    %29 = arith.mulf %24, %28 : vector<32x16xf32>
    %cst_8 = arith.constant 2.500000e-01 : f32
    %30 = vector.broadcast %cst_8 : f32 to vector<32x16xf32>
    %31 = arith.mulf %29, %30 : vector<32x16xf32>
    %cst_9 = arith.constant dense<0.000000e+00> : vector<16x16xf32>
    %32 = tpu.matmul %18, %19, %cst_9 {dimension_numbers = #tpu.dot_dimension_numbers<[0], [0], [1], [1], [0, 1, 1, 1], [], []>} : vector<32x16xf32>, vector<32x16xf32>, vector<16x16xf32> -> vector<16x16xf32>
    %cst_10 = arith.constant dense<0.000000e+00> : vector<32x16xf32>
    %33 = tpu.matmul %31, %32, %cst_10 {dimension_numbers = #tpu.dot_dimension_numbers<[1], [0], [0], [1], [0, 0, 1, 1], [], []>} : vector<32x16xf32>, vector<16x16xf32>, vector<32x16xf32> -> vector<32x16xf32>
    %34 = vector.extract_strided_slice %4 {offsets = [0, 16], sizes = [32, 16], strides = [1, 1]} : vector<32x64xf32> to vector<32x16xf32>
    %35 = vector.extract_strided_slice %16 {offsets = [0, 16], sizes = [32, 16], strides = [1, 1]} : vector<32x64xf32> to vector<32x16xf32>
    %36 = vector.extract_strided_slice %6 {offsets = [0, 16], sizes = [32, 16], strides = [1, 1]} : vector<32x64xf32> to vector<32x16xf32>
    %cst_11 = arith.constant dense<0xFF800000> : vector<32xf32>
    %37 = vector.multi_reduction <maximumf>, %34, %cst_11 [1] : vector<32x16xf32> to vector<32xf32>
    %38 = vector.shape_cast %37 : vector<32xf32> to vector<32x1xf32>
    %39 = vector.broadcast %38 : vector<32x1xf32> to vector<32x16xf32>
    %40 = arith.subf %34, %39 : vector<32x16xf32>
    %41 = math.exp %40 : vector<32x16xf32>
    %cst_12 = arith.constant dense<0.000000e+00> : vector<32xf32>
    %42 = vector.multi_reduction <add>, %41, %cst_12 [1] : vector<32x16xf32> to vector<32xf32>
    %43 = vector.shape_cast %42 : vector<32xf32> to vector<32x1xf32>
    %44 = tpu.reciprocal %43 : vector<32x1xf32> -> vector<32x1xf32>
    %45 = vector.broadcast %44 : vector<32x1xf32> to vector<32x16xf32>
    %46 = arith.mulf %41, %45 : vector<32x16xf32>
    %cst_13 = arith.constant 2.500000e-01 : f32
    %47 = vector.broadcast %cst_13 : f32 to vector<32x16xf32>
    %48 = arith.mulf %46, %47 : vector<32x16xf32>
    %cst_14 = arith.constant dense<0.000000e+00> : vector<16x16xf32>
    %49 = tpu.matmul %35, %36, %cst_14 {dimension_numbers = #tpu.dot_dimension_numbers<[0], [0], [1], [1], [0, 1, 1, 1], [], []>} : vector<32x16xf32>, vector<32x16xf32>, vector<16x16xf32> -> vector<16x16xf32>
    %cst_15 = arith.constant dense<0.000000e+00> : vector<32x16xf32>
    %50 = tpu.matmul %48, %49, %cst_15 {dimension_numbers = #tpu.dot_dimension_numbers<[1], [0], [0], [1], [0, 0, 1, 1], [], []>} : vector<32x16xf32>, vector<16x16xf32>, vector<32x16xf32> -> vector<32x16xf32>
    %51 = vector.extract_strided_slice %4 {offsets = [0, 32], sizes = [32, 16], strides = [1, 1]} : vector<32x64xf32> to vector<32x16xf32>
    %52 = vector.extract_strided_slice %16 {offsets = [0, 32], sizes = [32, 16], strides = [1, 1]} : vector<32x64xf32> to vector<32x16xf32>
    %53 = vector.extract_strided_slice %6 {offsets = [0, 32], sizes = [32, 16], strides = [1, 1]} : vector<32x64xf32> to vector<32x16xf32>
    %cst_16 = arith.constant dense<0xFF800000> : vector<32xf32>
    %54 = vector.multi_reduction <maximumf>, %51, %cst_16 [1] : vector<32x16xf32> to vector<32xf32>
    %55 = vector.shape_cast %54 : vector<32xf32> to vector<32x1xf32>
    %56 = vector.broadcast %55 : vector<32x1xf32> to vector<32x16xf32>
    %57 = arith.subf %51, %56 : vector<32x16xf32>
    %58 = math.exp %57 : vector<32x16xf32>
    %cst_17 = arith.constant dense<0.000000e+00> : vector<32xf32>
    %59 = vector.multi_reduction <add>, %58, %cst_17 [1] : vector<32x16xf32> to vector<32xf32>
    %60 = vector.shape_cast %59 : vector<32xf32> to vector<32x1xf32>
    %61 = tpu.reciprocal %60 : vector<32x1xf32> -> vector<32x1xf32>
    %62 = vector.broadcast %61 : vector<32x1xf32> to vector<32x16xf32>
    %63 = arith.mulf %58, %62 : vector<32x16xf32>
    %cst_18 = arith.constant 2.500000e-01 : f32
    %64 = vector.broadcast %cst_18 : f32 to vector<32x16xf32>
    %65 = arith.mulf %63, %64 : vector<32x16xf32>
    %cst_19 = arith.constant dense<0.000000e+00> : vector<16x16xf32>
    %66 = tpu.matmul %52, %53, %cst_19 {dimension_numbers = #tpu.dot_dimension_numbers<[0], [0], [1], [1], [0, 1, 1, 1], [], []>} : vector<32x16xf32>, vector<32x16xf32>, vector<16x16xf32> -> vector<16x16xf32>
    %cst_20 = arith.constant dense<0.000000e+00> : vector<32x16xf32>
    %67 = tpu.matmul %65, %66, %cst_20 {dimension_numbers = #tpu.dot_dimension_numbers<[1], [0], [0], [1], [0, 0, 1, 1], [], []>} : vector<32x16xf32>, vector<16x16xf32>, vector<32x16xf32> -> vector<32x16xf32>
    %68 = vector.extract_strided_slice %4 {offsets = [0, 48], sizes = [32, 16], strides = [1, 1]} : vector<32x64xf32> to vector<32x16xf32>
    %69 = vector.extract_strided_slice %16 {offsets = [0, 48], sizes = [32, 16], strides = [1, 1]} : vector<32x64xf32> to vector<32x16xf32>
    %70 = vector.extract_strided_slice %6 {offsets = [0, 48], sizes = [32, 16], strides = [1, 1]} : vector<32x64xf32> to vector<32x16xf32>
    %cst_21 = arith.constant dense<0xFF800000> : vector<32xf32>
    %71 = vector.multi_reduction <maximumf>, %68, %cst_21 [1] : vector<32x16xf32> to vector<32xf32>
    %72 = vector.shape_cast %71 : vector<32xf32> to vector<32x1xf32>
    %73 = vector.broadcast %72 : vector<32x1xf32> to vector<32x16xf32>
    %74 = arith.subf %68, %73 : vector<32x16xf32>
    %75 = math.exp %74 : vector<32x16xf32>
    %cst_22 = arith.constant dense<0.000000e+00> : vector<32xf32>
    %76 = vector.multi_reduction <add>, %75, %cst_22 [1] : vector<32x16xf32> to vector<32xf32>
    %77 = vector.shape_cast %76 : vector<32xf32> to vector<32x1xf32>
    %78 = tpu.reciprocal %77 : vector<32x1xf32> -> vector<32x1xf32>
    %79 = vector.broadcast %78 : vector<32x1xf32> to vector<32x16xf32>
    %80 = arith.mulf %75, %79 : vector<32x16xf32>
    %cst_23 = arith.constant 2.500000e-01 : f32
    %81 = vector.broadcast %cst_23 : f32 to vector<32x16xf32>
    %82 = arith.mulf %80, %81 : vector<32x16xf32>
    %cst_24 = arith.constant dense<0.000000e+00> : vector<16x16xf32>
    %83 = tpu.matmul %69, %70, %cst_24 {dimension_numbers = #tpu.dot_dimension_numbers<[0], [0], [1], [1], [0, 1, 1, 1], [], []>} : vector<32x16xf32>, vector<32x16xf32>, vector<16x16xf32> -> vector<16x16xf32>
    %cst_25 = arith.constant dense<0.000000e+00> : vector<32x16xf32>
    %84 = tpu.matmul %82, %83, %cst_25 {dimension_numbers = #tpu.dot_dimension_numbers<[1], [0], [0], [1], [0, 0, 1, 1], [], []>} : vector<32x16xf32>, vector<16x16xf32>, vector<32x16xf32> -> vector<32x16xf32>
    %85 = tpu.concatenate %33, %50, %67, %84 in 1 : vector<32x16xf32>, vector<32x16xf32>, vector<32x16xf32>, vector<32x16xf32> -> vector<32x64xf32>
    %c0_26 = arith.constant 0 : index
    %c0_27 = arith.constant 0 : index
    %86 = vector.load %arg3[%c0_26, %c0_27] : memref<64x32xf32, #tpu.memory_space<vmem>>, vector<64x32xf32>
    %cst_28 = arith.constant dense<0.000000e+00> : vector<32x32xf32>
    %87 = tpu.matmul %85, %86, %cst_28 {dimension_numbers = #tpu.dot_dimension_numbers<[1], [0], [0], [1], [0, 0, 1, 1], [], []>} : vector<32x64xf32>, vector<64x32xf32>, vector<32x32xf32> -> vector<32x32xf32>
    %c0_29 = arith.constant 0 : index
    %c0_30 = arith.constant 0 : index
    %88 = vector.load %arg4[%c0_29, %c0_30] : memref<1x32xf32, #tpu.memory_space<vmem>>, vector<1x32xf32>
    %89 = vector.broadcast %88 : vector<1x32xf32> to vector<32x32xf32>
    %90 = arith.addf %87, %89 : vector<32x32xf32>
    %91 = arith.mulf %90, %90 : vector<32x32xf32>
    %cst_31 = arith.constant dense<0.000000e+00> : vector<32xf32>
    %92 = vector.multi_reduction <add>, %91, %cst_31 [1] : vector<32x32xf32> to vector<32xf32>
    %93 = vector.shape_cast %92 : vector<32xf32> to vector<32x1xf32>
    %cst_32 = arith.constant 1.000000e-24 : f32
    %94 = vector.broadcast %cst_32 : f32 to vector<32x1xf32>
    %95 = arith.maximumf %93, %94 : vector<32x1xf32>
    %96 = math.rsqrt %95 : vector<32x1xf32>
    %97 = vector.broadcast %96 : vector<32x1xf32> to vector<32x32xf32>
    %98 = arith.mulf %90, %97 : vector<32x32xf32>
    %c0_33 = arith.constant 0 : index
    %c0_34 = arith.constant 0 : index
    %99 = vector.load %arg5[%c0_33, %c0_34] : memref<1x32xf32, #tpu.memory_space<vmem>>, vector<1x32xf32>
    %100 = vector.broadcast %99 : vector<1x32xf32> to vector<32x32xf32>
    %101 = arith.mulf %98, %100 : vector<32x32xf32>
    %cst_35 = arith.constant 5.65685415 : f32
    %102 = vector.broadcast %cst_35 : f32 to vector<32x32xf32>
    %103 = arith.mulf %101, %102 : vector<32x32xf32>
    %c0_36 = arith.constant 0 : index
    %c0_37 = arith.constant 0 : index
    %c0_38 = arith.constant 0 : index
    %104 = vector.load %arg6[%c0_36, %c0_37, %c0_38] : memref<1x32x32xf32, #tpu.memory_space<vmem>>, vector<1x32x32xf32>
    %105 = vector.shape_cast %104 : vector<1x32x32xf32> to vector<32x32xf32>
    %106 = vector.shape_cast %103 : vector<32x32xf32> to vector<1x32x32xf32>
    tpu.vector_store %arg6[%c0_36, %c0_37, %c0_38], %106 {strides = array<i32>} : memref<1x32x32xf32, #tpu.memory_space<vmem>>, vector<1x32x32xf32>,
    return
  }
  func.func @transform_0(%arg0: i32) -> (i32, i32, i32) {
    %c0_i32 = arith.constant 0 : i32
    %c0_i32_0 = arith.constant 0 : i32
    %c0_i32_1 = arith.constant 0 : i32
    return %arg0, %c0_i32, %c0_i32_0 : i32, i32, i32
  }
  func.func @transform_1(%arg0: i32) -> (i32, i32) {
    %c0_i32 = arith.constant 0 : i32
    %c0_i32_0 = arith.constant 0 : i32
    %c0_i32_1 = arith.constant 0 : i32
    return %c0_i32, %c0_i32_0 : i32, i32
  }
  func.func @transform_2(%arg0: i32) -> (i32, i32) {
    %c0_i32 = arith.constant 0 : i32
    %c0_i32_0 = arith.constant 0 : i32
    %c0_i32_1 = arith.constant 0 : i32
    return %c0_i32, %c0_i32_0 : i32, i32
  }
  func.func @transform_3(%arg0: i32) -> (i32, i32) {
    %c0_i32 = arith.constant 0 : i32
    %c0_i32_0 = arith.constant 0 : i32
    %c0_i32_1 = arith.constant 0 : i32
    return %c0_i32, %c0_i32_0 : i32, i32
  }
  func.func @transform_4(%arg0: i32) -> (i32, i32) {
    %c0_i32 = arith.constant 0 : i32
    %c0_i32_0 = arith.constant 0 : i32
    %c0_i32_1 = arith.constant 0 : i32
    return %c0_i32, %c0_i32_0 : i32, i32
  }
  func.func @transform_5(%arg0: i32) -> (i32, i32, i32) {
    %c0_i32 = arith.constant 0 : i32
    %c0_i32_0 = arith.constant 0 : i32
    %c0_i32_1 = arith.constant 0 : i32
    return %arg0, %c0_i32, %c0_i32_0 : i32, i32, i32
  }
}

</mosaic_0001>

<bundles_post_ra>
// kernel: _lambda_.1
= control target key start
LH: loop header
LB: loop body
LE: loop exit
PB: predicated region body
PF: predicated region fallthrough
CT: control target
= control target key end

     0   :  { %s1823_s18 = smov 0   ;;  %s2366_s0 = inlined_call_operand.vmem [shape: f32[2,32,32], index: 0, kind: input, shape index: {}]   ;;  %s2367_s1 = inlined_call_operand.vmem [shape: f32[32,192], index: 1, kind: input, shape index: {}]   ;;  %s2368_s2 = inlined_call_operand.vmem [shape: f32[64,32], index: 2, kind: input, shape index: {}]   ;;  %s2369_s3 = inlined_call_operand.vmem [shape: f32[1,32], index: 3, kind: input, shape index: {}]   ;;  %s2370_s4 = inlined_call_operand.vmem [shape: f32[1,32], index: 4, kind: input, shape index: {}]   ;;  %s2371_s5 = inlined_call_operand.vmem [shape: f32[2,32,32], index: 5, kind: output, shape index: {}]  }
   0x1 LB: > { %s1591_s19 = sadd.s32 4294967295, %s1784_s18   ;;  %p1595_p0 = scmp.ge.s32.totalorder %s1784_s18, 1  ;;  %s1784_s18 = sphi %s1823_s18, %s15_s18  }
   0x2   : > { %p187_p1 = scmp.lt.s32.totalorder %s1784_s18, 3 }
   0x4   : > { %p188_p2 = pnand %p1595_p0, %p187_p1 }
   0x5   : > { %p215_p3 = scmp.lt.s32.totalorder (!%p188_p2), %s1591_s19, 1  ;;  %s1786_s15 = smov (!%p188_p2), 96  }
   0x6   : > { %191 = sbr.rel (%p188_p2) target bundleno = 1508 (0x5e4), region = 40  ;;  %s1787_s16 = smov (!%p188_p2), 112  }
   0x7   : > { %s1788_s17 = smov (!%p188_p2), 80   ;;  %s1789_s20 = smov (!%p188_p2), 64  }
   0x8   : > { %s1790_s21 = smov (!%p188_p2), 48   ;;  %s1791_s22 = smov (!%p188_p2), 16  }
   0x9   : > { %s1792_s23 = smov (!%p188_p2), 32  }
   0xb   : > { %v235_v0 = vld [vmem:[%s2367_s1 + $0x30] sm:$0xff]  ;;  %v236_v1 = vld [vmem:[%s2367_s1 + $0x38] sm:$0xff]  ;;  %v233_v2 = vld [vmem:[%s2367_s1 + $0x20] sm:$0xff]  ;;  %s2391_s19 = smov (!%p215_p3, %s1591_s19), 1  ;;  %vm237_vm0 = vcmask 261120   ;;  %vm839_vm1 = vcmask 392448  }
   0xc   : > { %262 = vmatpush.msra.mxu0 %v235_v0  ;;  %291 = vmatpush.msra.mxu1 %v236_v1  ;;  %v234_v3 = vld [vmem:[%s2367_s1 + $0x28] sm:$0xff]  ;;  %v231_v4 = vld [vmem:[%s2367_s1 + $0x10] sm:$0xff]  ;;  %v232_v5 = vld [vmem:[%s2367_s1 + $0x18] sm:$0xff]  ;;  %s1638_s11 = sshll.u32 %s2391_s19, 5  ;;  %vm584_vm2 = vcmask 261248   ;;  %vm1090_vm3 = vcmask 523648  }
   0xd   : > { %1640 = vmatpush.msra.mxu3 %v235_v0  ;;  %v229_v6 = vld [vmem:[%s2367_s1] sm:$0xff]  ;;  %v230_v7 = vld [vmem:[%s2367_s1 + $0x8] sm:$0xff]  ;;  %s219_s14 = scalar_lea.vmem %s2366_s0, %s1638_s11  ;;  %vm308_vm4 = vcmask 1048064   ;;  %vm365_vm9 = vcmask 130048   ;;  %s2352_s24 = scalar_lea.vmem %s2371_s5, %s1638_s11 }
   0xe   : > { %263 = vmatpush.msra.mxu0 %v233_v2  ;;  %292 = vmatpush.msra.mxu1 %v234_v3  ;;  %v225_v8 = vld [vmem:[%s219_s14] sm:$0xff]  ;;  %v228_v9 = vld [vmem:[%s219_s14 + $0x18] sm:$0xff]  ;;  %v226_v10 = vld [vmem:[%s219_s14 + $0x8] sm:$0xff] }
   0xf   : > { %1641 = vmatpush.msra.mxu3 %v233_v2  ;;  %v227_v11 = vld [vmem:[%s219_s14 + $0x10] sm:$0xff] }
  0x10   : > { %264 = vmatpush.msra.mxu0 %v231_v4  ;;  %293 = vmatpush.msra.mxu1 %v232_v5 }
  0x11   : > { %1642 = vmatpush.msra.mxu3 %v231_v4 }
  0x12   : > { %265 = vmatpush.msra.mxu0 %v229_v6  ;;  %294 = vmatpush.msra.mxu1 %v230_v7 }
  0x13   : > { %1600 = vmatmul.msk.f32.vlgmr.msra.gmra.mxu0 %vm237_vm0, %v225_v8  ;;  %1604 = vmatmul.msk.f32.vlgmr.msra.gmra.mxu1 %vm237_vm0, %v225_v8 }
  0x14   : > { %1643 = vmatpush.msra.mxu3 %v229_v6 }
  0x15   : > { %1603 = vmatmul.msk.f32.vlgmr.msra.gmra.mxu3 %vm237_vm0, %v228_v9 }
  0x1b   : > { %1601 = vmatmul.msk.f32.gmra.mxu0 %vm237_vm0, %v226_v10  ;;  %1605 = vmatmul.msk.f32.gmra.mxu1 %vm237_vm0, %v226_v10 }
  0x23   : > { %1602 = vmatmul.msk.f32.gmra.mxu0 %vm237_vm0, %v227_v11  ;;  %1606 = vmatmul.msk.f32.gmra.mxu1 %vm237_vm0, %v227_v11 }
  0x2b   : > { %1607 = vmatmul.msk.f32.gmra.mxu1 %vm237_vm0, %v228_v9 }
  0x90   : > { %v1871_v12 = vpop.f32.mrf.mxu0  ;;  %v296_v13 = vpop.f32.mrf.mxu1 }
  0x91   : > { %v840_v14 = vsel %vm839_vm1, %v1871_v12, -inf  ;;  %v585_v15 = vsel %vm584_vm2, %v1871_v12, -inf  ;;  %v1091_v20 = vsel %vm1090_vm3, %v1871_v12, -inf  ;;  %v309_v24 = vsel %vm308_vm4, %v1871_v12, -inf }
  0x92   : > { %841 = vmax.xlane.f32.xlu0 %v840_v14  ;;  %586 = vmax.xlane.f32.xlu2 %v585_v15 }
  0x98   : > { %v1877_v16 = vpop.f32.mrf.mxu0  ;;  %v1879_v17 = vpop.f32.mrf.mxu3 }
  0x99   : > { %v299_v18 = vpop.f32.mrf.mxu1  ;;  %v594_v19 = vsel %vm584_vm2, %v1879_v17, -inf  ;;  %v310_v21 = vsel %vm308_vm4, %v1877_v16, -inf  ;;  %v312_v22 = vsel %vm308_vm4, %v1879_v17, -inf  ;;  %v588_v2 = vsel %vm584_vm2, %v1877_v16, -inf }
  0x9a   : > { %595 = vmax.xlane.f32.xlu0 %v594_v19  ;;  %1092 = vmax.xlane.f32.xlu2 %v1091_v20  ;;  %v313_v27 = vmax.f32 %v309_v24, %v310_v21  ;;  %v1664_v34 = vpack.i.bf16 %v296_v13, %v299_v18 }
  0xa0   : > { %v1889_v23 = vpop.f32.mrf.mxu0 }
  0xa1   : > { %v311_v25 = vsel %vm308_vm4, %v1889_v23, -inf  ;;  %v302_v26 = vpop.f32.mrf.mxu1  ;;  %v591_v8 = vsel %vm584_vm2, %v1889_v23, -inf  ;;  %v846_v15 = vsel %vm839_vm1, %v1889_v23, -inf }
  0xa2   : > { %v314_v28 = vmax.f32 %v311_v25, %v312_v22 }
  0xa4   : > { %v315_v29 = vmax.f32 %v313_v27, %v314_v28 }
  0xa6   : > { %v316_v30 = vrot.slane %v315_v29, 4 }
  0xa8   : > { %v317_v31 = vmax.f32 %v315_v29, %v316_v30  ;;  %v849_v30 = vsel %vm839_vm1, %v1879_v17, -inf }
  0xa9   : > { %v305_v32 = vpop.f32.mrf.mxu1 }
  0xaa   : > { %v1895_v33 = vpack.i.bf16 %v302_v26, %v305_v32  ;;  %532 = vmatpush.msrb.mxu1 %v305_v32  ;;  %1644 = vmatpush.msra.mxu2 %v305_v32  ;;  %v318_v35 = vrot.slane %v317_v31, 2  ;;  %v366_v32 = vsel %vm365_vm9, %v1871_v12, -inf }
  0xac   : > { %1690 = vrot.lane.b32.xlu1 %v1895_v33, %s1786_s15  ;;  %533 = vmatpush.msrb.mxu1 %v302_v26  ;;  %v319_v36 = vmax.f32 %v317_v31, %v318_v35 }
  0xad   : > { %1645 = vmatpush.msra.mxu2 %v302_v26 }
  0xae   : > { %1665 = vrot.lane.b32.xlu0 %v1664_v34, %s1787_s16  ;;  %534 = vmatpush.msrb.mxu1 %v299_v18  ;;  %v320_v37 = vrot.slane %v319_v36, 1 }
  0xaf   : > { %1646 = vmatpush.msra.mxu2 %v299_v18  ;;  %v1094_v18 = vsel %vm1090_vm3, %v1877_v16, -inf }
  0xb0   : > { %535 = vmatpush.msrb.mxu1 %v296_v13  ;;  %v321_v38 = vmax.f32 %v319_v36, %v320_v37  ;;  %v1097_v37 = vsel %vm1090_vm3, %v1889_v23, -inf }
  0xb1   : > { %1647 = vmatpush.msra.mxu2 %v296_v13  ;;  %v843_v13 = vsel %vm839_vm1, %v1877_v16, -inf }
  0xb2   : > { %1675 = vrot.lane.b32.xlu2 %v1664_v34, %s1786_s15  ;;  %v322_v39 = vsub.f32 %v1871_v12, %v321_v38  ;;  %v323_v40 = vsub.f32 %v1877_v16, %v321_v38  ;;  %v324_v41 = vsub.f32 %v1889_v23, %v321_v38  ;;  %v325_v42 = vsub.f32 %v1879_v17, %v321_v38 }
  0xb4   : > { %v326_v43 = vmul.f32 1.442695, %v322_v39  ;;  %v328_v44 = vmul.f32 1.442695, %v323_v40  ;;  %v330_v45 = vmul.f32 1.442695, %v324_v41 }
  0xb5   : > { %v332_v46 = vmul.f32 1.442695, %v325_v42  ;;  %v1100_v40 = vsel %vm1090_vm3, %v1879_v17, -inf }
  0xb6   : > { %1670 = vrot.lane.b32.xlu0 %v1664_v34, %s1788_s17  ;;  %1696 = vpow2.f32 %v326_v43 }
  0xb7   : > { %1698 = vpow2.f32 %v328_v44 }
  0xb8   : > { %1700 = vpow2.f32 %v330_v45 }
  0xb9   : > { %1702 = vpow2.f32 %v332_v46 }
  0xbc   : > { %v1697_v47 = vpop.eup %1696 }
  0xbd   : > { %v1699_v48 = vpop.eup %1698  ;;  %v334_v49 = vsel %vm308_vm4, %v1697_v47, 0.0 }
  0xbe   : > { %v1701_v50 = vpop.eup %1700  ;;  %v335_v51 = vsel %vm308_vm4, %v1699_v48, 0.0 }
  0xbf   : > { %v1703_v52 = vpop.eup %1702  ;;  %v336_v53 = vadd.f32 %v335_v51, %v334_v49  ;;  %v337_v54 = vsel %vm308_vm4, %v1701_v50, 0.0 }
  0xc0   : > { %v339_v56 = vsel %vm308_vm4, %v1703_v52, 0.0 }
  0xc1   : > { %v338_v55 = vadd.f32 %v337_v54, %v336_v53 }
  0xc3   : > { %v340_v57 = vadd.f32 %v339_v56, %v338_v55 }
  0xc5   : > { %v341_v58 = vrot.slane %v340_v57, 4 }
  0xc7   : > { %v342_v59 = vadd.f32 %v341_v58, %v340_v57 }
  0xc9   : > { %v343_v60 = vrot.slane %v342_v59, 2 }
  0xcb   : > { %v344_v61 = vadd.f32 %v343_v60, %v342_v59 }
  0xcd   : > { %v345_v62 = vrot.slane %v344_v61, 1 }
  0xcf   : > { %v346_v63 = vadd.f32 %v345_v62, %v344_v61 }
  0xd1   : > { %1704 = vrcp.f32 %v346_v63  ;;  %v358_v4 = vand.u32 2147483648, %v346_v63  ;;  %v356_v6 = vand.u32 2147483647, %v346_v63  ;;  %vm352_vm6 = vweird.f32 %v346_v63 }
  0xd3   : > { %v359_v9 = vor.u32 1.1754944e-38, %v358_v4  ;;  %vm357_vm8 = vcmp.eq.f32.partialorder %v356_v6, 8.507059e+37 }
  0xd7   : > { %v1705_v0 = vpop.eup %1704 }
  0xd8   : > { %v348_v1 = vmul.f32 %v1705_v0, %v346_v63  ;;  %vm353_vm5 = vweird.f32 %v1705_v0 }
  0xd9   : > { %vm354_vm7 = vmor %vm352_vm6, %vm353_vm5 }
  0xda   : > { %v349_v3 = vsub.f32 1.0, %v348_v1 }
  0xdb   : > { %589 = vmax.xlane.f32.xlu2 %v588_v2 }
  0xdc   : > { %v350_v5 = vmul.f32 %v1705_v0, %v349_v3 }
  0xde   : > { %v351_v7 = vadd.f32 %v1705_v0, %v350_v5 }
  0xe0   : > { %592 = vmax.xlane.f32.xlu0 %v591_v8  ;;  %v355_v10 = vsel %vm354_vm7, %v1705_v0, %v351_v7 }
  0xe1   : > { %v360_v11 = vsel %vm357_vm8, %v359_v9, %v355_v10 }
  0xe2   : > { %v363_v14 = vmul.f32 %v1701_v50, %v360_v11  ;;  %v364_v19 = vmul.f32 %v1703_v52, %v360_v11  ;;  %v362_v20 = vmul.f32 %v1699_v48, %v360_v11  ;;  %v361_v21 = vmul.f32 %v1697_v47, %v360_v11 }
  0xe3   : > { %844 = vmax.xlane.f32.xlu2 %v843_v13 }
  0xe4   : > { %474 = vrot.lane.b32.xlu1 %v363_v14, %s1789_s20 }
  0xe8   : > { %847 = vmax.xlane.f32.xlu0 %v846_v15  ;;  %v369_v15 = vsel %vm365_vm9, %v1877_v16, -inf }
  0xeb   : > { %1095 = vmax.xlane.f32.xlu2 %v1094_v18 }
  0xec   : > { %476 = vrot.lane.b32.xlu1 %v364_v19, %s1789_s20 }
  0xf4   : > { %707 = vrot.lane.b32.xlu1 %v364_v19, %s1790_s21 }
  0xfc   : > { %1209 = vrot.lane.b32.xlu1 %v362_v20, %s1791_s22  ;;  %1680 = vrot.lane.b32.xlu0 %v1895_v33, %s1787_s16 }
 0x103   : > { %1685 = vrot.lane.b32.xlu2 %v1895_v33, %s1788_s17 }
 0x104   : > { %470 = vrot.lane.b32.xlu0 %v361_v21, %s1789_s20 }
 0x105   : > { %v587_v22 = vpop.xlane.xlu2 %586  ;;  %v1940_v33 = vpop.xlane.xlu0 %841 }
 0x106   : > { %v597_v35 = vsub.f32 %v1871_v12, %v587_v22  ;;  %v852_v7 = vsub.f32 %v1871_v12, %v1940_v33 }
 0x108   : > { %v601_v38 = vmul.f32 1.442695, %v597_v35  ;;  %v856_v8 = vmul.f32 1.442695, %v852_v7 }
 0x10a   : > { %1706 = vpow2.f32 %v601_v38 }
 0x10b   : > { %701 = vrot.lane.b32.xlu2 %v361_v21, %s1790_s21  ;;  %1708 = vpow2.f32 %v856_v8 }
 0x10c   : > { %472 = vrot.lane.b32.xlu0 %v362_v20, %s1789_s20 }
 0x10d   : > { %v1929_v24 = vpop.xlane.xlu2 %1092  ;;  %v1942_v34 = vpop.xlane.xlu0 %595 }
 0x110   : > { %v1953_v42 = vpop.eup %1706 }
 0x111   : > { %v1972_v11 = vpop.eup %1708 }
 0x113   : > { %703 = vrot.lane.b32.xlu2 %v362_v20, %s1790_s21 }
 0x114   : > { %705 = vrot.lane.b32.xlu0 %v363_v14, %s1790_s21 }
 0x115   : > { %v1676_v28 = vpop.permute.xlu2 %1675 }
 0x116   : > { %v1677_v29 = vunpack.i.l.bf16 %v1676_v28  ;;  %v1678_v31 = vunpack.i.h.bf16 %v1676_v28 }
 0x11b   : > { %1207 = vrot.lane.b32.xlu2 %v361_v21, %s1791_s22 }
 0x11c   : > { %958 = vrot.lane.b32.xlu0 %v362_v20, %s1792_s23 }
 0x11e   : > { %v1691_v25 = vpop.permute.xlu1 %1690 }
 0x11f   : > { %v1692_v26 = vunpack.i.l.bf16 %v1691_v25  ;;  %v1693_v27 = vunpack.i.h.bf16 %v1691_v25 }
 0x120   : > { %v1666_v36 = vpop.permute.xlu0 %1665 }
 0x121   : > { %1030 = vmatpush.msrb.mxu0 %v1692_v26  ;;  %v1667_v54 = vunpack.i.l.bf16 %v1666_v36  ;;  %v1668_v55 = vunpack.i.h.bf16 %v1666_v36 }
 0x123   : > { %1031 = vmatpush.msrb.mxu0 %v1693_v27  ;;  %956 = vrot.lane.b32.xlu2 %v361_v21, %s1792_s23 }
 0x124   : > { %960 = vrot.lane.b32.xlu0 %v363_v14, %s1792_s23 }
 0x125   : > { %1032 = vmatpush.msrb.mxu0 %v1677_v29  ;;  %v372_v29 = vsel %vm365_vm9, %v1889_v23, -inf }
 0x126   : > { %850 = vmax.xlane.f32.xlu1 %v849_v30 }
 0x127   : > { %1033 = vmatpush.msrb.mxu0 %v1678_v31 }
 0x128   : > { %v1951_v41 = vpop.permute.xlu0 %1670 }
 0x12c   : > { %962 = vrot.lane.b32.xlu0 %v364_v19, %s1792_s23 }
 0x12e   : > { %367 = vmax.xlane.f32.xlu1 %v366_v32 }
 0x147   : > { %1211 = vrot.lane.b32.xlu1 %v363_v14, %s1791_s22  ;;  %v1103_v14 = vsub.f32 %v1871_v12, %v1929_v24 }
 0x149   : > { %v1107_v18 = vmul.f32 1.442695, %v1103_v14 }
 0x14c   : > { %1098 = vmax.xlane.f32.xlu2 %v1097_v37 }
 0x14e   : > { %v590_v39 = vpop.xlane.xlu2 %589 }
 0x14f   : > { %1213 = vrot.lane.b32.xlu1 %v364_v19, %s1791_s22  ;;  %v598_v9 = vsub.f32 %v1877_v16, %v590_v39  ;;  %v600_v19 = vsub.f32 %v1879_v17, %v1942_v34 }
 0x151   : > { %v603_v10 = vmul.f32 1.442695, %v598_v9  ;;  %v607_v22 = vmul.f32 1.442695, %v600_v19 }
 0x153   : > { %v1959_v44 = vpop.xlane.xlu0 %592  ;;  %1710 = vpow2.f32 %v603_v10 }
 0x154   : > { %1101 = vmax.xlane.f32.xlu2 %v1100_v40  ;;  %1712 = vpow2.f32 %v1107_v18 }
 0x155   : > { %1714 = vpow2.f32 %v607_v22 }
 0x156   : > { %v1955_v43 = vpop.xlane.xlu2 %844  ;;  %v475_v48 = vpop.permute.xlu1 %474 }
 0x157   : > { %613 = vrot.lane.b32.xlu1 %v1953_v42, %s1787_s16 }
 0x159   : > { %v1976_v13 = vpop.eup %1710 }
 0x15a   : > { %v1990_v27 = vpop.eup %1712 }
 0x15b   : > { %v1963_v46 = vpop.xlane.xlu0 %847  ;;  %v1999_v34 = vpop.eup %1714 }
 0x15c   : > { %v854_v20 = vsub.f32 %v1889_v23, %v1963_v46  ;;  %v853_v46 = vsub.f32 %v1877_v16, %v1955_v43 }
 0x15e   : > { %v1961_v45 = vpop.xlane.xlu2 %1095  ;;  %v477_v53 = vpop.permute.xlu1 %476  ;;  %v860_v26 = vmul.f32 1.442695, %v854_v20 }
 0x160   : > { %1716 = vpow2.f32 %v860_v26 }
 0x166   : > { %v1965_v47 = vpop.permute.xlu2 %1685  ;;  %v708_v58 = vpop.permute.xlu1 %707 }
 0x167   : > { %v2001_v35 = vpop.eup %1716  ;;  %v1687_v37 = vunpack.i.l.bf16 %v1965_v47 }
 0x16e   : > { %v1681_v49 = vpop.permute.xlu0 %1680  ;;  %v702_v50 = vpop.permute.xlu2 %701 }
 0x16f   : > { %v1682_v51 = vunpack.i.l.bf16 %v1681_v49  ;;  %713 = vxpose.xlu0.b32.start [1/4] (short) (narrow) %v702_v50, 16  ;;  %v1683_v52 = vunpack.i.h.bf16 %v1681_v49  ;;  %v1210_v62 = vpop.permute.xlu1 %1209  ;;  %v1672_v50 = vunpack.i.l.bf16 %v1951_v41 }
 0x171   : > { %779 = vmatpush.msrb.mxu2 %v1682_v51  ;;  %v1673_v51 = vunpack.i.h.bf16 %v1951_v41  ;;  %v1104_v41 = vsub.f32 %v1877_v16, %v1961_v45 }
 0x173   : > { %780 = vmatpush.msrb.mxu2 %v1683_v52  ;;  %v858_v52 = vmul.f32 1.442695, %v853_v46 }
 0x175   : > { %781 = vmatpush.msrb.mxu2 %v1667_v54 }
 0x176   : > { %v471_v56 = vpop.permute.xlu0 %470  ;;  %v704_v57 = vpop.permute.xlu2 %703 }
 0x177   : > { %782 = vmatpush.msrb.mxu2 %v1668_v55  ;;  %714 = vxpose.xlu0.b32.cont [2/4] (short) (narrow) %v704_v57, 16  ;;  %v1109_v55 = vmul.f32 1.442695, %v1104_v41 }
 0x17e   : > { %v473_v59 = vpop.permute.xlu0 %472  ;;  %v1208_v60 = vpop.permute.xlu2 %1207 }
 0x17f   : > { %1219 = vxpose.xlu2.b32.start [1/4] (short) (narrow) %v1208_v60, 16 }
 0x186   : > { %v706_v61 = vpop.permute.xlu0 %705  ;;  %v957_v63 = vpop.permute.xlu2 %956 }
 0x187   : > { %715 = vxpose.xlu0.b32.cont [3/4] (short) (narrow) %v706_v61, 16  ;;  %1220 = vxpose.xlu2.b32.cont [2/4] (short) (narrow) %v1210_v62, 16 }
 0x18c   : > { %482 = vxpose.xlu1.b32.start [1/4] (short) (narrow) %v471_v56, 16 }
 0x18e   : > { %v959_v0 = vpop.permute.xlu0 %958 }
 0x18f   : > { %716 = vxpose.xlu0.b32.end [4/4] (short) (narrow) %v708_v58, 16 }
 0x194   : > { %483 = vxpose.xlu1.b32.cont [2/4] (short) (narrow) %v473_v59, 16 }
 0x196   : > { %v961_v1 = vpop.permute.xlu0 %960 }
 0x197   : > { %968 = vxpose.xlu0.b32.start [1/4] (short) (narrow) %v957_v63, 16 }
 0x199   : > { %v851_v2 = vpop.xlane.xlu1 %850 }
 0x19a   : > { %v855_v28 = vsub.f32 %v1879_v17, %v851_v2  ;;  %v375_v2 = vsel %vm365_vm9, %v1879_v17, -inf }
 0x19c   : > { %484 = vxpose.xlu1.b32.cont [3/4] (short) (narrow) %v475_v48, 16  ;;  %v862_v32 = vmul.f32 1.442695, %v855_v28  ;;  %v1688_v48 = vunpack.i.h.bf16 %v1965_v47  ;;  %v599_v47 = vsub.f32 %v1889_v23, %v1959_v44 }
 0x19e   : > { %v963_v3 = vpop.permute.xlu0 %962 }
 0x19f   : > { %969 = vxpose.xlu0.b32.cont [2/4] (short) (narrow) %v959_v0, 16 }
 0x1a1   : > { %v1967_v4 = vpop.xlane.xlu1 %367 }
 0x1a2   : > { %v378_v45 = vsub.f32 %v1871_v12, %v1967_v4 }
 0x1a4   : > { %485 = vxpose.xlu1.b32.end [4/4] (short) (narrow) %v477_v53, 16  ;;  %v605_v53 = vmul.f32 1.442695, %v599_v47  ;;  %v382_v59 = vmul.f32 1.442695, %v378_v45 }
 0x1a7   : > { %970 = vxpose.xlu0.b32.cont [3/4] (short) (narrow) %v961_v1, 16 }
 0x1af   : > { %971 = vxpose.xlu0.b32.end [4/4] (short) (narrow) %v963_v3, 16 }
 0x1b9   : > { %v1212_v5 = vpop.permute.xlu1 %1211 }
 0x1ba   : > { %1221 = vxpose.xlu2.b32.cont [3/4] (short) (narrow) %v1212_v5, 16 }
 0x1bf   : > { %v1099_v21 = vpop.xlane.xlu2 %1098 }
 0x1c0   : > { %v1105_v24 = vsub.f32 %v1889_v23, %v1099_v21 }
 0x1c1   : > { %v1214_v6 = vpop.permute.xlu1 %1213 }
 0x1c2   : > { %1222 = vxpose.xlu2.b32.end [4/4] (short) (narrow) %v1214_v6, 16  ;;  %v1111_v30 = vmul.f32 1.442695, %v1105_v24 }
 0x1c4   : > { %1718 = vpow2.f32 %v1111_v30 }
 0x1c5   : > { %1720 = vpow2.f32 %v862_v32 }
 0x1c7   : > { %v1102_v33 = vpop.xlane.xlu2 %1101 }
 0x1c8   : > { %v1106_v36 = vsub.f32 %v1879_v17, %v1102_v33 }
 0x1c9   : > { %v1988_v25 = vpop.permute.xlu1 %613 }
 0x1ca   : > { %v1113_v38 = vmul.f32 1.442695, %v1106_v36  ;;  %v2010_v40 = vpop.eup %1718  ;;  %v625_v62 = vsel %vm365_vm9, %v1988_v25, 0.0 }
 0x1cb   : > { %v2015_v49 = vpop.eup %1720 }
 0x1cc   : > { %1722 = vpow2.f32 %v1113_v38 }
 0x1cd   : > { %1724 = vpow2.f32 %v858_v52 }
 0x1ce   : > { %1726 = vpow2.f32 %v605_v53 }
 0x1cf   : > { %1728 = vpow2.f32 %v1109_v55 }
 0x1d0   : > { %1730 = vpow2.f32 %v382_v59 }
 0x1d2   : > { %v2023_v43 = vpop.eup %1722 }
 0x1d3   : > { %v2029_v54 = vpop.eup %1724 }
 0x1d4   : > { %v2035_v56 = vpop.eup %1726 }
 0x1d5   : > { %v2040_v44 = vpop.eup %1728 }
 0x1d6   : > { %v2051_v63 = vpop.eup %1730 }
 0x1d7   : > { %v390_v12 = vsel %vm365_vm9, %v2051_v63, 0.0 }
 0x1fe   : > { %868 = vrot.lane.b32.xlu1 %v1972_v11, %s1786_s15 }
 0x206   : > { %615 = vrot.lane.b32.xlu1 %v1976_v13, %s1787_s16 }
 0x21b   : > { %v729_v57 = vpop.trf.xlu0 }
 0x220   : > { %370 = vmax.xlane.f32.xlu0 %v369_v15 }
 0x223   : > { %v730_v58 = vpop.trf.xlu0 }
 0x22b   : > { %1119 = vrot.lane.b32.xlu2 %v1990_v27, %s1788_s17 }
 0x230   : > { %373 = vmax.xlane.f32.xlu1 %v372_v29  ;;  %v498_v31 = vpop.trf.xlu1 }
 0x231   : > { %1608 = vmatmul.msk.f32.vlgmr.msrb.gmra.mxu1 %vm237_vm0, %v498_v31 }
 0x233   : > { %619 = vrot.lane.b32.xlu2 %v1999_v34, %s1787_s16 }
 0x234   : > { %872 = vrot.lane.b32.xlu0 %v2001_v35, %s1786_s15 }
 0x238   : > { %v499_v39 = vpop.trf.xlu1 }
 0x239   : > { %1609 = vmatmul.msk.f32.vlgmr.msra.gmra.mxu2 %vm237_vm0, %v499_v39 }
 0x23a   : > { %1281 = vmatpush.msra.mxu2 %v1687_v37 }
 0x23b   : > { %1123 = vrot.lane.b32.xlu2 %v2010_v40, %s1788_s17  ;;  %v984_v61 = vpop.trf.xlu0 }
 0x23c   : > { %1282 = vmatpush.msra.mxu2 %v1688_v48  ;;  %874 = vrot.lane.b32.xlu0 %v2015_v49, %s1786_s15 }
 0x23d   : > { %1620 = vmatmul.msk.f32.vlgmr.msrb.gmra.mxu0 %vm237_vm0, %v984_v61 }
 0x23e   : > { %1283 = vmatpush.msra.mxu2 %v1672_v50 }
 0x240   : > { %1284 = vmatpush.msra.mxu2 %v1673_v51 }
 0x241   : > { %1614 = vmatmul.msk.f32.vlgmr.msrb.gmra.mxu2 %vm237_vm0, %v729_v57 }
 0x243   : > { %1125 = vrot.lane.b32.xlu2 %v2023_v43, %s1788_s17  ;;  %v1235_v60 = vpop.trf.xlu2  ;;  %v985_v1 = vpop.trf.xlu0 }
 0x245   : > { %1621 = vmatmul.msk.f32.gmra.mxu0 %vm237_vm0, %v985_v1 }
 0x249   : > { %870 = vrot.lane.b32.xlu1 %v2029_v54, %s1786_s15  ;;  %1615 = vmatmul.msk.f32.gmra.mxu2 %vm237_vm0, %v730_v58 }
 0x24b   : > { %v1236_v0 = vpop.trf.xlu2 }
 0x251   : > { %617 = vrot.lane.b32.xlu1 %v2035_v56, %s1787_s16  ;;  %1626 = vmatmul.msk.f32.vlgmr.msra.gmra.mxu2 %vm237_vm0, %v1235_v60 }
 0x259   : > { %1121 = vrot.lane.b32.xlu1 %v2040_v44, %s1788_s17  ;;  %1627 = vmatmul.msk.f32.gmra.mxu2 %vm237_vm0, %v1236_v0 }
 0x266   : > { %626 = vadd.xlane.f32.xlu0 %v625_v62 }
 0x26c   : > { %391 = vadd.xlane.f32.xlu2 %v390_v12 }
 0x270   : > { %v869_v3 = vpop.permute.xlu1 %868 }
 0x271   : > { %v880_v4 = vsel %vm365_vm9, %v869_v3, 0.0 }
 0x278   : > { %v616_v5 = vpop.permute.xlu1 %615 }
 0x279   : > { %v628_v6 = vsel %vm365_vm9, %v616_v5, 0.0 }
 0x283   : > { %376 = vmax.xlane.f32.xlu1 %v375_v2 }
 0x285   : > { %v1120_v10 = vpop.permute.xlu2 %1119 }
 0x286   : > { %v1131_v14 = vsel %vm365_vm9, %v1120_v10, 0.0 }
 0x28b   : > { %881 = vadd.xlane.f32.xlu1 %v880_v4 }
 0x28d   : > { %v620_v25 = vpop.permute.xlu2 %619 }
 0x28e   : > { %v634_v46 = vsel %vm365_vm9, %v620_v25, 0.0 }
 0x293   : > { %629 = vadd.xlane.f32.xlu1 %v628_v6  ;;  %v371_v7 = vpop.xlane.xlu0 %370 }
 0x294   : > { %v379_v8 = vsub.f32 %v1877_v16, %v371_v7 }
 0x295   : > { %v1124_v30 = vpop.permute.xlu2 %1123 }
 0x296   : > { %v384_v9 = vmul.f32 1.442695, %v379_v8  ;;  %v1137_v33 = vsel %vm365_vm9, %v1124_v30, 0.0 }
 0x298   : > { %1732 = vpow2.f32 %v384_v9 }
 0x29b   : > { %1132 = vadd.xlane.f32.xlu1 %v1131_v14 }
 0x29d   : > { %v1126_v39 = vpop.permute.xlu2 %1125 }
 0x29e   : > { %v2063_v15 = vpop.eup %1732  ;;  %v1140_v48 = vsel %vm365_vm9, %v1126_v39, 0.0 }
 0x29f   : > { %v393_v18 = vsel %vm365_vm9, %v2063_v15, 0.0 }
 0x2a3   : > { %394 = vadd.xlane.f32.xlu1 %v393_v18  ;;  %v374_v19 = vpop.xlane.xlu1 %373 }
 0x2a4   : > { %v380_v20 = vsub.f32 %v1889_v23, %v374_v19 }
 0x2a6   : > { %v386_v21 = vmul.f32 1.442695, %v380_v20  ;;  %v873_v31 = vpop.permute.xlu0 %872 }
 0x2a7   : > { %v886_v36 = vsel %vm365_vm9, %v873_v31, 0.0 }
 0x2a8   : > { %1734 = vpow2.f32 %v386_v21 }
 0x2ae   : > { %v2069_v26 = vpop.eup %1734  ;;  %v537_v38 = vpop.f32.mrf.mxu1 }
 0x2af   : > { %v396_v29 = vsel %vm365_vm9, %v2069_v26, 0.0  ;;  %v875_v50 = vpop.permute.xlu0 %874 }
 0x2b0   : > { %v889_v51 = vsel %vm365_vm9, %v875_v50, 0.0 }
 0x2ba   : > { %v1035_v9 = vpop.f32.mrf.mxu0 }
 0x2bb   : > { %v871_v22 = vpop.permute.xlu1 %870 }
 0x2bc   : > { %v883_v16 = vsel %vm365_vm9, %v871_v22, 0.0  ;;  %v540_v37 = vpop.f32.mrf.mxu2 }
 0x2bd   : > { %884 = vadd.xlane.f32.xlu1 %v883_v16  ;;  %569 = vmatpush.msrb.mxu3 %v540_v37 }
 0x2bf   : > { %570 = vmatpush.msrb.mxu3 %v537_v38 }
 0x2c2   : > { %v1038_v22 = vpop.f32.mrf.mxu0 }
 0x2c3   : > { %v618_v24 = vpop.permute.xlu1 %617  ;;  %1075 = vmatpush.msra.mxu1 %v1038_v22 }
 0x2c4   : > { %v631_v28 = vsel %vm365_vm9, %v618_v24, 0.0  ;;  %v784_v1 = vpop.f32.mrf.mxu2 }
 0x2c5   : > { %632 = vadd.xlane.f32.xlu0 %v631_v28  ;;  %397 = vadd.xlane.f32.xlu1 %v396_v29 }
 0x2c6   : > { %1076 = vmatpush.msra.mxu1 %v1035_v9 }
 0x2cb   : > { %v1122_v23 = vpop.permute.xlu1 %1121 }
 0x2cc   : > { %v1134_v32 = vsel %vm365_vm9, %v1122_v23, 0.0  ;;  %v787_v7 = vpop.f32.mrf.mxu2 }
 0x2cd   : > { %1135 = vadd.xlane.f32.xlu2 %v1134_v32  ;;  %1138 = vadd.xlane.f32.xlu1 %v1137_v33 }
 0x2ce   : > { %887 = vadd.xlane.f32.xlu0 %v886_v36  ;;  %824 = vmatpush.msra.mxu3 %v787_v7 }
 0x2d0   : > { %825 = vmatpush.msra.mxu3 %v784_v1 }
 0x2d4   : > { %v1286_v19 = vpop.f32.mrf.mxu2 }
 0x2d5   : > { %635 = vadd.xlane.f32.xlu2 %v634_v46  ;;  %1141 = vadd.xlane.f32.xlu1 %v1140_v48 }
 0x2d9   : > { %v627_v60 = vpop.xlane.xlu0 %626 }
 0x2da   : > { %v648_v25 = vand.u32 2147483648, %v627_v60  ;;  %vm642_vm15 = vweird.f32 %v627_v60  ;;  %v646_v29 = vand.u32 2147483647, %v627_v60 }
 0x2dc   : > { %v649_v33 = vor.u32 1.1754944e-38, %v648_v25  ;;  %v1289_v37 = vpop.f32.mrf.mxu2  ;;  %vm647_vm5 = vcmp.eq.f32.partialorder %v646_v29, 8.507059e+37 }
 0x2dd   : > { %890 = vadd.xlane.f32.xlu2 %v889_v51  ;;  %1326 = vmatpush.msra.mxu0 %v1289_v37 }
 0x2df   : > { %v392_v52 = vpop.xlane.xlu2 %391  ;;  %1327 = vmatpush.msra.mxu0 %v1286_v19 }
 0x2e0   : > { %1736 = vrcp.f32 %v392_v52  ;;  %v413_v55 = vand.u32 2147483648, %v392_v52  ;;  %v411_v58 = vand.u32 2147483647, %v392_v52  ;;  %vm407_vm11 = vweird.f32 %v392_v52 }
 0x2e1   : > { %1738 = vrcp.f32 %v627_v60 }
 0x2e2   : > { %v414_v59 = vor.u32 1.1754944e-38, %v413_v55  ;;  %vm412_vm13 = vcmp.eq.f32.partialorder %v411_v58, 8.507059e+37 }
 0x2e6   : > { %v1737_v47 = vpop.eup %1736 }
 0x2e7   : > { %v403_v53 = vmul.f32 %v1737_v47, %v392_v52  ;;  %vm408_vm10 = vweird.f32 %v1737_v47  ;;  %v1739_v4 = vpop.eup %1738 }
 0x2e8   : > { %vm409_vm12 = vmor %vm407_vm11, %vm408_vm10  ;;  %v638_v6 = vmul.f32 %v1739_v4, %v627_v60  ;;  %vm643_vm14 = vweird.f32 %v1739_v4 }
 0x2e9   : > { %v404_v41 = vsub.f32 1.0, %v403_v53  ;;  %vm2087_vm1 = vmor %vm642_vm15, %vm643_vm14 }
 0x2ea   : > { %v639_v10 = vsub.f32 1.0, %v638_v6 }
 0x2eb   : > { %v405_v57 = vmul.f32 %v1737_v47, %v404_v41 }
 0x2ec   : > { %v640_v18 = vmul.f32 %v1739_v4, %v639_v10 }
 0x2ed   : > { %v406_v45 = vadd.f32 %v1737_v47, %v405_v57 }
 0x2ee   : > { %v641_v16 = vadd.f32 %v1739_v4, %v640_v18 }
 0x2ef   : > { %v410_v61 = vsel %vm409_vm12, %v1737_v47, %v406_v45 }
 0x2f0   : > { %v415_v62 = vsel %vm412_vm13, %v414_v59, %v410_v61  ;;  %v645_v32 = vsel %vm2087_vm1, %v1739_v4, %v641_v16 }
 0x2f1   : > { %v458_v0 = vmul.f32 %v2051_v63, %v415_v62  ;;  %v650_v51 = vsel %vm647_vm5, %v649_v33, %v645_v32 }
 0x2f2   : > { %v693_v55 = vmul.f32 %v1953_v42, %v650_v51 }
 0x2f3   : > { %v462_v12 = vmul.f32 0.25, %v458_v0 }
 0x2f4   : > { %v697_v62 = vmul.f32 0.25, %v693_v55 }
 0x2f5   : > { %1610 = vmatmul.msk.f32.vlgmr.msrb.gmra.mxu3 %vm365_vm9, %v462_v12 }
 0x2f6   : > { %v377_v2 = vpop.xlane.xlu1 %376 }
 0x2f7   : > { %v381_v3 = vsub.f32 %v1879_v17, %v377_v2 }
 0x2f9   : > { %v388_v5 = vmul.f32 1.442695, %v381_v3 }
 0x2fb   : > { %1740 = vpow2.f32 %v388_v5 }
 0x2fe   : > { %v882_v8 = vpop.xlane.xlu1 %881 }
 0x2ff   : > { %1742 = vrcp.f32 %v882_v8  ;;  %v903_v28 = vand.u32 2147483648, %v882_v8  ;;  %v901_v23 = vand.u32 2147483647, %v882_v8  ;;  %vm897_vm3 = vweird.f32 %v882_v8 }
 0x301   : > { %v2083_v63 = vpop.eup %1740  ;;  %v904_v39 = vor.u32 1.1754944e-38, %v903_v28  ;;  %vm902_vm6 = vcmp.eq.f32.partialorder %v901_v23, 8.507059e+37 }
 0x302   : > { %v399_v14 = vsel %vm365_vm9, %v2083_v63, 0.0 }
 0x303   : > { %400 = vadd.xlane.f32.xlu0 %v399_v14 }
 0x305   : > { %v1743_v17 = vpop.eup %1742 }
 0x306   : > { %v893_v20 = vmul.f32 %v1743_v17, %v882_v8  ;;  %v630_v21 = vpop.xlane.xlu1 %629  ;;  %vm898_vm2 = vweird.f32 %v1743_v17 }
 0x307   : > { %1744 = vrcp.f32 %v630_v21  ;;  %vm899_vm4 = vmor %vm897_vm3, %vm898_vm2  ;;  %v662_v41 = vand.u32 2147483648, %v630_v21  ;;  %v660_v45 = vand.u32 2147483647, %v630_v21  ;;  %vm656_vm8 = vweird.f32 %v630_v21 }
 0x308   : > { %v894_v24 = vsub.f32 1.0, %v893_v20 }
 0x309   : > { %v663_v61 = vor.u32 1.1754944e-38, %v662_v41  ;;  %vm661_vm11 = vcmp.eq.f32.partialorder %v660_v45, 8.507059e+37 }
 0x30a   : > { %v895_v31 = vmul.f32 %v1743_v17, %v894_v24 }
 0x30c   : > { %v896_v36 = vadd.f32 %v1743_v17, %v895_v31 }
 0x30d   : > { %v1745_v38 = vpop.eup %1744 }
 0x30e   : > { %v652_v46 = vmul.f32 %v1745_v38, %v630_v21  ;;  %v1133_v48 = vpop.xlane.xlu1 %1132  ;;  %v900_v50 = vsel %vm899_vm4, %v1743_v17, %v896_v36  ;;  %vm657_vm7 = vweird.f32 %v1745_v38 }
 0x30f   : > { %1746 = vrcp.f32 %v1133_v48  ;;  %v905_v52 = vsel %vm902_vm6, %v904_v39, %v900_v50  ;;  %vm658_vm10 = vmor %vm656_vm8, %vm657_vm7  ;;  %v1154_v3 = vand.u32 2147483648, %v1133_v48  ;;  %v1152_v6 = vand.u32 2147483647, %v1133_v48 }
 0x310   : > { %v653_v47 = vsub.f32 1.0, %v652_v46  ;;  %v948_v53 = vmul.f32 %v1972_v11, %v905_v52  ;;  %vm1148_vm13 = vweird.f32 %v1133_v48 }
 0x311   : > { %v1155_v9 = vor.u32 1.1754944e-38, %v1154_v3  ;;  %vm1153_vm15 = vcmp.eq.f32.partialorder %v1152_v6, 8.507059e+37 }
 0x312   : > { %v654_v57 = vmul.f32 %v1745_v38, %v653_v47  ;;  %v952_v58 = vmul.f32 0.25, %v948_v53 }
 0x314   : > { %1045 = vrot.lane.b32.xlu2 %v952_v58, %s1786_s15  ;;  %v655_v59 = vadd.f32 %v1745_v38, %v654_v57 }
 0x315   : > { %v1747_v60 = vpop.eup %1746 }
 0x316   : > { %v1144_v0 = vmul.f32 %v1747_v60, %v1133_v48  ;;  %v395_v12 = vpop.xlane.xlu1 %394  ;;  %v659_v1 = vsel %vm658_vm10, %v1745_v38, %v655_v59  ;;  %vm1149_vm12 = vweird.f32 %v1747_v60 }
 0x317   : > { %1748 = vrcp.f32 %v395_v12  ;;  %794 = vrot.lane.b32.xlu0 %v697_v62, %s1787_s16  ;;  %v664_v42 = vsel %vm661_vm11, %v663_v61, %v659_v1  ;;  %vm1150_vm14 = vmor %vm1148_vm13, %vm1149_vm12  ;;  %v425_v22 = vand.u32 2147483647, %v395_v12  ;;  %vm421_vm2 = vweird.f32 %v395_v12 }
 0x318   : > { %v1145_v11 = vsub.f32 1.0, %v1144_v0  ;;  %v694_v2 = vmul.f32 %v1976_v13, %v664_v42  ;;  %v427_v13 = vand.u32 2147483648, %v395_v12 }
 0x319   : > { %vm426_vm4 = vcmp.eq.f32.partialorder %v425_v22, 8.507059e+37 }
 0x31a   : > { %v1146_v4 = vmul.f32 %v1747_v60, %v1145_v11  ;;  %v698_v5 = vmul.f32 0.25, %v694_v2  ;;  %v428_v25 = vor.u32 1.1754944e-38, %v427_v13 }
 0x31c   : > { %796 = vrot.lane.b32.xlu1 %v698_v5, %s1787_s16  ;;  %v1147_v7 = vadd.f32 %v1747_v60, %v1146_v4 }
 0x31d   : > { %v1749_v8 = vpop.eup %1748 }
 0x31e   : > { %v417_v10 = vmul.f32 %v1749_v8, %v395_v12  ;;  %v1151_v14 = vsel %vm1150_vm14, %v1747_v60, %v1147_v7  ;;  %vm422_vm1 = vweird.f32 %v1749_v8 }
 0x31f   : > { %v1156_v18 = vsel %vm1153_vm15, %v1155_v9, %v1151_v14  ;;  %vm423_vm3 = vmor %vm421_vm2, %vm422_vm1 }
 0x320   : > { %v418_v19 = vsub.f32 1.0, %v417_v10  ;;  %v1199_v17 = vmul.f32 %v1990_v27, %v1156_v18 }
 0x322   : > { %v419_v20 = vmul.f32 %v1749_v8, %v418_v19  ;;  %v1203_v21 = vmul.f32 0.25, %v1199_v17 }
 0x324   : > { %1296 = vrot.lane.b32.xlu0 %v1203_v21, %s1788_s17  ;;  %v420_v16 = vadd.f32 %v1749_v8, %v419_v20 }
 0x326   : > { %v424_v24 = vsel %vm423_vm3, %v1749_v8, %v420_v16 }
 0x327   : > { %v429_v28 = vsel %vm426_vm4, %v428_v25, %v424_v24 }
 0x328   : > { %v459_v29 = vmul.f32 %v2063_v15, %v429_v28 }
 0x32a   : > { %v463_v30 = vmul.f32 0.25, %v459_v29 }
 0x32c   : > { %1611 = vmatmul.msk.f32.gmra.mxu3 %vm365_vm9, %v463_v30 }
 0x330   : > { %v885_v27 = vpop.xlane.xlu1 %884 }
 0x331   : > { %1750 = vrcp.f32 %v885_v27  ;;  %v917_v38 = vand.u32 2147483648, %v885_v27  ;;  %v915_v39 = vand.u32 2147483647, %v885_v27  ;;  %vm911_vm6 = vweird.f32 %v885_v27 }
 0x333   : > { %v918_v51 = vor.u32 1.1754944e-38, %v917_v38  ;;  %vm2119_vm8 = vcmp.eq.f32.partialorder %v915_v39, 8.507059e+37 }
 0x337   : > { %v1751_v31 = vpop.eup %1750 }
 0x338   : > { %v907_v23 = vmul.f32 %v1751_v31, %v885_v27  ;;  %v398_v32 = vpop.xlane.xlu1 %397  ;;  %v2103_v33 = vpop.xlane.xlu0 %632  ;;  %vm912_vm5 = vweird.f32 %v1751_v31 }
 0x339   : > { %1752 = vrcp.f32 %v398_v32  ;;  %vm2110_vm7 = vmor %vm911_vm6, %vm912_vm5  ;;  %v441_v55 = vand.u32 2147483648, %v398_v32  ;;  %v676_v60 = vand.u32 2147483648, %v2103_v33  ;;  %v439_v61 = vand.u32 2147483647, %v398_v32 }
 0x33a   : > { %v908_v36 = vsub.f32 1.0, %v907_v23  ;;  %1754 = vrcp.f32 %v2103_v33  ;;  %vm435_vm10 = vweird.f32 %v398_v32  ;;  %v674_v0 = vand.u32 2147483647, %v2103_v33 }
 0x33b   : > { %vm670_vm11 = vweird.f32 %v2103_v33  ;;  %v442_v11 = vor.u32 1.1754944e-38, %v441_v55  ;;  %v677_v4 = vor.u32 1.1754944e-38, %v676_v60  ;;  %vm2144_vm13 = vcmp.eq.f32.partialorder %v439_v61, 8.507059e+37 }
 0x33c   : > { %v909_v37 = vmul.f32 %v1751_v31, %v908_v36  ;;  %vm2152_vm15 = vcmp.eq.f32.partialorder %v674_v0, 8.507059e+37 }
 0x33e   : > { %v910_v46 = vadd.f32 %v1751_v31, %v909_v37 }
 0x33f   : > { %v2106_v15 = vpop.eup %1752 }
 0x340   : > { %v2108_v48 = vpop.eup %1754  ;;  %v431_v52 = vmul.f32 %v2106_v15, %v398_v32  ;;  %v2115_v47 = vpop.xlane.xlu2 %1135  ;;  %v914_v45 = vsel %vm2110_vm7, %v1751_v31, %v910_v46  ;;  %vm436_vm12 = vweird.f32 %v2106_v15 }
 0x341   : > { %v2117_v53 = vpop.xlane.xlu1 %1138  ;;  %v666_v57 = vmul.f32 %v2108_v48, %v2103_v33  ;;  %1756 = vrcp.f32 %v2115_v47  ;;  %v2126_v58 = vpop.xlane.xlu0 %887  ;;  %v1168_v1 = vand.u32 2147483648, %v2115_v47  ;;  %v919_v42 = vsel %vm2119_vm8, %v918_v51, %v914_v45  ;;  %vm2159_vm1 = vmor %vm435_vm10, %vm436_vm12 }
 0x342   : > { %v432_v59 = vsub.f32 1.0, %v431_v52  ;;  %1758 = vrcp.f32 %v2117_v53  ;;  %v949_v3 = vmul.f32 %v2029_v54, %v919_v42  ;;  %v1182_v5 = vand.u32 2147483648, %v2117_v53 }
 0x343   : > { %v667_v62 = vsub.f32 1.0, %v666_v57  ;;  %1760 = vrcp.f32 %v2126_v58  ;;  %vm671_vm14 = vweird.f32 %v2108_v48  ;;  %v931_v9 = vand.u32 2147483648, %v2126_v58 }
 0x344   : > { %v433_v12 = vmul.f32 %v2106_v15, %v432_v59  ;;  %v953_v10 = vmul.f32 0.25, %v949_v3  ;;  %vm1162_vm2 = vweird.f32 %v2115_v47  ;;  %v1169_v17 = vor.u32 1.1754944e-38, %v1168_v1  ;;  %vm672_vm5 = vmor %vm670_vm11, %vm671_vm14 }
 0x345   : > { %v668_v2 = vmul.f32 %v2108_v48, %v667_v62  ;;  %vm1176_vm3 = vweird.f32 %v2117_v53  ;;  %vm925_vm4 = vweird.f32 %v2126_v58  ;;  %v1183_v28 = vor.u32 1.1754944e-38, %v1182_v5 }
 0x346   : > { %v434_v6 = vadd.f32 %v2106_v15, %v433_v12  ;;  %1047 = vrot.lane.b32.xlu0 %v953_v10, %s1786_s15  ;;  %v1166_v30 = vand.u32 2147483647, %v2115_v47  ;;  %v932_v31 = vor.u32 1.1754944e-38, %v931_v9  ;;  %v929_v23 = vand.u32 2147483647, %v2126_v58 }
 0x347   : > { %v2148_v8 = vpop.eup %1756  ;;  %v669_v25 = vadd.f32 %v2108_v48, %v668_v2 }
 0x348   : > { %v2156_v54 = vpop.eup %1758  ;;  %v1158_v19 = vmul.f32 %v2148_v8, %v2115_v47  ;;  %v2167_v13 = vpop.xlane.xlu2 %635  ;;  %v438_v16 = vsel %vm2159_vm1, %v2106_v15, %v434_v6  ;;  %vm1163_vm6 = vweird.f32 %v2148_v8  ;;  %v1180_v15 = vand.u32 2147483647, %v2117_v53 }
 0x349   : > { %v2169_v20 = vpop.xlane.xlu1 %1141  ;;  %v1761_v21 = vpop.eup %1760  ;;  %v1172_v22 = vmul.f32 %v2156_v54, %v2117_v53  ;;  %1762 = vrcp.f32 %v2167_v13  ;;  %v443_v37 = vsel %vm2144_vm13, %v442_v11, %v438_v16  ;;  %v673_v46 = vsel %vm672_vm5, %v2108_v48, %v669_v25  ;;  %vm2202_vm8 = vmor %vm1162_vm2, %vm1163_vm6 }
 0x34a   : > { %v1159_v24 = vsub.f32 1.0, %v1158_v19  ;;  %v921_v29 = vmul.f32 %v1761_v21, %v2126_v58  ;;  %1764 = vrcp.f32 %v2169_v20  ;;  %v460_v39 = vmul.f32 %v2069_v26, %v443_v37 }
 0x34b   : > { %v1173_v27 = vsub.f32 1.0, %v1172_v22  ;;  %vm1177_vm7 = vweird.f32 %v2156_v54  ;;  %v678_v50 = vsel %vm2152_vm15, %v677_v4, %v673_v46  ;;  %vm926_vm10 = vweird.f32 %v1761_v21 }
 0x34c   : > { %v1160_v32 = vmul.f32 %v2148_v8, %v1159_v24  ;;  %v922_v36 = vsub.f32 1.0, %v921_v29  ;;  %v464_v26 = vmul.f32 0.25, %v460_v39  ;;  %v695_v48 = vmul.f32 %v2035_v56, %v678_v50  ;;  %vm2218_vm12 = vmor %vm1176_vm3, %vm1177_vm7 }
 0x34d   : > { %v1174_v38 = vmul.f32 %v2156_v54, %v1173_v27  ;;  %vm1167_vm11 = vcmp.eq.f32.partialorder %v1166_v30, 8.507059e+37  ;;  %vm684_vm13 = vweird.f32 %v2167_v13  ;;  %vm930_vm14 = vcmp.eq.f32.partialorder %v929_v23, 8.507059e+37  ;;  %vm927_vm15 = vmor %vm925_vm4, %vm926_vm10 }
 0x34e   : > { %v923_v33 = vmul.f32 %v1761_v21, %v922_v36  ;;  %v1161_v51 = vadd.f32 %v2148_v8, %v1160_v32  ;;  %1612 = vmatmul.msk.f32.gmra.mxu3 %vm365_vm9, %v464_v26  ;;  %v699_v56 = vmul.f32 0.25, %v695_v48  ;;  %v690_v0 = vand.u32 2147483648, %v2167_v13 }
 0x34f   : > { %v1763_v52 = vpop.eup %1762  ;;  %v1175_v55 = vadd.f32 %v2156_v54, %v1174_v38  ;;  %v688_v2 = vand.u32 2147483647, %v2167_v13  ;;  %vm1190_vm2 = vweird.f32 %v2169_v20  ;;  %vm1181_vm3 = vcmp.eq.f32.partialorder %v1180_v15, 8.507059e+37 }
 0x350   : > { %v680_v57 = vmul.f32 %v1763_v52, %v2167_v13  ;;  %v2209_v45 = vpop.xlane.xlu2 %890  ;;  %v1165_v59 = vsel %vm2202_vm8, %v2148_v8, %v1161_v51  ;;  %v924_v47 = vadd.f32 %v1761_v21, %v923_v33  ;;  %v1765_v60 = vpop.eup %1764  ;;  %798 = vrot.lane.b32.xlu2 %v699_v56, %s1787_s16  ;;  %vm685_vm1 = vweird.f32 %v1763_v52 }
 0x351   : > { %1766 = vrcp.f32 %v2209_v45  ;;  %v1186_v53 = vmul.f32 %v1765_v60, %v2169_v20  ;;  %v1170_v12 = vsel %vm1167_vm11, %v1169_v17, %v1165_v59  ;;  %v1179_v11 = vsel %vm2218_vm12, %v2156_v54, %v1175_v55  ;;  %vm686_vm5 = vmor %vm684_vm13, %vm685_vm1 }
 0x352   : > { %v681_v62 = vsub.f32 1.0, %v680_v57  ;;  %v1200_v1 = vmul.f32 %v2040_v44, %v1170_v12  ;;  %v928_v42 = vsel %vm927_vm15, %v1761_v21, %v924_v47  ;;  %vm1191_vm4 = vweird.f32 %v1765_v60  ;;  %v1405_v21 = vld [vmem:[%s2368_s2 + $0x18] sm:$0xff] }
 0x353   : > { %v1187_v58 = vsub.f32 1.0, %v1186_v53  ;;  %v933_v4 = vsel %vm930_vm14, %v932_v31, %v928_v42  ;;  %v1184_v44 = vsel %vm1181_vm3, %v1183_v28, %v1179_v11  ;;  %v691_v10 = vor.u32 1.1754944e-38, %v690_v0  ;;  %vm2246_vm7 = vmor %vm1190_vm2, %vm1191_vm4 }
 0x354   : > { %v682_v3 = vmul.f32 %v1763_v52, %v681_v62  ;;  %v1204_v5 = vmul.f32 0.25, %v1200_v1  ;;  %v950_v6 = vmul.f32 %v2001_v35, %v933_v4  ;;  %v1196_v14 = vand.u32 2147483648, %v2169_v20 }
 0x355   : > { %v1188_v7 = vmul.f32 %v1765_v60, %v1187_v58  ;;  %vm689_vm6 = vcmp.eq.f32.partialorder %v688_v2, 8.507059e+37  ;;  %v1194_v17 = vand.u32 2147483647, %v2169_v20  ;;  %v1201_v13 = vmul.f32 %v2010_v40, %v1184_v44 }
 0x356   : > { %v683_v8 = vadd.f32 %v1763_v52, %v682_v3  ;;  %1298 = vrot.lane.b32.xlu1 %v1204_v5, %s1788_s17  ;;  %v954_v54 = vmul.f32 0.25, %v950_v6  ;;  %v1197_v28 = vor.u32 1.1754944e-38, %v1196_v14  ;;  %v945_v29 = vand.u32 2147483648, %v2209_v45 }
 0x357   : > { %v1767_v9 = vpop.eup %1766  ;;  %v1189_v35 = vadd.f32 %v1765_v60, %v1188_v7  ;;  %v943_v20 = vand.u32 2147483647, %v2209_v45  ;;  %vm1195_vm10 = vcmp.eq.f32.partialorder %v1194_v17, 8.507059e+37  ;;  %v1205_v31 = vmul.f32 0.25, %v1201_v13  ;;  %v1406_v17 = vld [vmem:[%s2368_s2 + $0x20] sm:$0xff] }
 0x358   : > { %v935_v18 = vmul.f32 %v1767_v9, %v2209_v45  ;;  %v687_v19 = vsel %vm686_vm5, %v1763_v52, %v683_v8  ;;  %1049 = vrot.lane.b32.xlu0 %v954_v54, %s1786_s15  ;;  %vm940_vm8 = vweird.f32 %v1767_v9  ;;  %vm939_vm11 = vweird.f32 %v2209_v45 }
 0x359   : > { %v692_v22 = vsel %vm689_vm6, %v691_v10, %v687_v19  ;;  %v1193_v24 = vsel %vm2246_vm7, %v1765_v60, %v1189_v35  ;;  %vm941_vm12 = vmor %vm939_vm11, %vm940_vm8  ;;  %vm944_vm13 = vcmp.eq.f32.partialorder %v943_v20, 8.507059e+37  ;;  %v1408_v19 = vld [vmem:[%s2368_s2 + $0x30] sm:$0xff]  ;;  %v1407_v35 = vld [vmem:[%s2368_s2 + $0x28] sm:$0xff]  ;;  %vm1397_vm3 = vcmask 392192  }
 0x35a   : > { %v936_v16 = vsub.f32 1.0, %v935_v18  ;;  %v696_v25 = vmul.f32 %v1999_v34, %v692_v22  ;;  %v1198_v23 = vsel %vm1195_vm10, %v1197_v28, %v1193_v24  ;;  %v946_v34 = vor.u32 1.1754944e-38, %v945_v29  ;;  %v1409_v18 = vld [vmem:[%s2368_s2 + $0x38] sm:$0xff]  ;;  %v1402_v24 = vld [vmem:[%s2368_s2] sm:$0xff] }
 0x35b   : > { %v1202_v32 = vmul.f32 %v2023_v43, %v1198_v23  ;;  %1435 = vmatpush.msrb.mxu2 %v1409_v18  ;;  %vm1414_vm4 = vcmask 523264  }
 0x35c   : > { %v937_v30 = vmul.f32 %v1767_v9, %v936_v16  ;;  %v700_v27 = vmul.f32 0.25, %v696_v25  ;;  %v1404_v16 = vld [vmem:[%s2368_s2 + $0x10] sm:$0xff]  ;;  %v1403_v25 = vld [vmem:[%s2368_s2 + $0x8] sm:$0xff] }
 0x35d   : > { %v1206_v39 = vmul.f32 0.25, %v1202_v32  ;;  %1436 = vmatpush.msrb.mxu2 %v1408_v19 }
 0x35e   : > { %800 = vrot.lane.b32.xlu2 %v700_v27, %s1787_s16  ;;  %v938_v40 = vadd.f32 %v1767_v9, %v937_v30  ;;  %1300 = vrot.lane.b32.xlu1 %v1205_v31, %s1788_s17 }
 0x35f   : > { %1437 = vmatpush.msrb.mxu2 %v1407_v35 }
 0x360   : > { %v942_v36 = vsel %vm941_vm12, %v1767_v9, %v938_v40 }
 0x361   : > { %v947_v37 = vsel %vm944_vm13, %v946_v34, %v942_v36  ;;  %1438 = vmatpush.msrb.mxu2 %v1406_v17 }
 0x362   : > { %v951_v38 = vmul.f32 %v2015_v49, %v947_v37 }
 0x363   : > { %1439 = vmatpush.msrb.mxu2 %v1405_v21 }
 0x364   : > { %v955_v46 = vmul.f32 0.25, %v951_v38 }
 0x365   : > { %1440 = vmatpush.msrb.mxu2 %v1404_v16 }
 0x366   : > { %1302 = vrot.lane.b32.xlu2 %v1206_v39, %s1788_s17  ;;  %1051 = vrot.lane.b32.xlu0 %v955_v46, %s1786_s15 }
 0x367   : > { %1441 = vmatpush.msrb.mxu2 %v1403_v25 }
 0x369   : > { %1442 = vmatpush.msrb.mxu2 %v1402_v24 }
 0x36e   : > { %v1046_v15 = vpop.permute.xlu2 %1045 }
 0x36f   : > { %1622 = vmatmul.msk.f32.vlgmr.msra.gmra.mxu1 %vm365_vm9, %v1046_v15 }
 0x376   : > { %v401_v33 = vpop.xlane.xlu0 %400 }
 0x377   : > { %1768 = vrcp.f32 %v401_v33  ;;  %v455_v43 = vand.u32 2147483648, %v401_v33  ;;  %v453_v26 = vand.u32 2147483647, %v401_v33  ;;  %vm449_vm15 = vweird.f32 %v401_v33 }
 0x378   : > { %v572_v2 = vpop.f32.mrf.mxu3 }
 0x379   : > { %v456_v48 = vor.u32 1.1754944e-38, %v455_v43  ;;  %vm454_vm2 = vcmp.eq.f32.partialorder %v453_v26, 8.507059e+37 }
 0x37d   : > { %v1769_v50 = vpop.eup %1768 }
 0x37e   : > { %v445_v51 = vmul.f32 %v1769_v50, %v401_v33  ;;  %vm450_vm14 = vweird.f32 %v1769_v50 }
 0x37f   : > { %vm451_vm1 = vmor %vm449_vm15, %vm450_vm14 }
 0x380   : > { %v446_v52 = vsub.f32 1.0, %v445_v51 }
 0x382   : > { %v447_v41 = vmul.f32 %v1769_v50, %v446_v52 }
 0x384   : > { %v448_v49 = vadd.f32 %v1769_v50, %v447_v41 }
 0x386   : > { %v452_v55 = vsel %vm451_vm1, %v1769_v50, %v448_v49 }
 0x387   : > { %v457_v57 = vsel %vm454_vm2, %v456_v48, %v452_v55  ;;  %v1694_v48 = vld [vmem:[%s2369_s3] ss:$0 sm:$0xff] }
 0x388   : > { %v461_v45 = vmul.f32 %v2083_v63, %v457_v57 }
 0x389   : > { %v795_v47 = vpop.permute.xlu0 %794 }
 0x38a   : > { %v465_v59 = vmul.f32 0.25, %v461_v45 }
 0x38c   : > { %1613 = vmatmul.msk.f32.gmra.mxu3 %vm365_vm9, %v465_v59 }
 0x38e   : > { %v797_v61 = vpop.permute.xlu1 %796 }
 0x394   : > { %1616 = vmatmul.msk.f32.vlgmr.msra.gmra.mxu3 %vm365_vm9, %v795_v47 }
 0x396   : > { %v1297_v60 = vpop.permute.xlu0 %1296 }
 0x397   : > { %1628 = vmatmul.msk.f32.vlgmr.msra.gmra.mxu0 %vm365_vm9, %v1297_v60 }
 0x39c   : > { %1617 = vmatmul.msk.f32.gmra.mxu3 %vm365_vm9, %v797_v61 }
 0x3aa   : > { %v799_v56 = vpop.permute.xlu2 %798 }
 0x3ab   : > { %1618 = vmatmul.msk.f32.gmra.mxu3 %vm365_vm9, %v799_v56 }
 0x3af   : > { %v575_v3 = vpop.f32.mrf.mxu3 }
 0x3b8   : > { %v801_v62 = vpop.permute.xlu2 %800  ;;  %v1048_v0 = vpop.permute.xlu0 %1047 }
 0x3b9   : > { %1619 = vmatmul.msk.f32.gmra.mxu3 %vm365_vm9, %v801_v62  ;;  %1623 = vmatmul.msk.f32.gmra.mxu1 %vm365_vm9, %v1048_v0 }
 0x3c0   : > { %v1303_v42 = vpop.permute.xlu2 %1302 }
 0x3c8   : > { %v1299_v63 = vpop.permute.xlu1 %1298 }
 0x3c9   : > { %1629 = vmatmul.msk.f32.gmra.mxu0 %vm365_vm9, %v1299_v63 }
 0x3ca   : > { %v1050_v53 = vpop.permute.xlu0 %1049 }
 0x3cb   : > { %1624 = vmatmul.msk.f32.gmra.mxu1 %vm365_vm9, %v1050_v53 }
 0x3d0   : > { %v1301_v12 = vpop.permute.xlu1 %1300 }
 0x3d1   : > { %1630 = vmatmul.msk.f32.gmra.mxu0 %vm365_vm9, %v1301_v12  ;;  %v578_v58 = vpop.f32.mrf.mxu3 }
 0x3d8   : > { %v1052_v1 = vpop.permute.xlu0 %1051 }
 0x3d9   : > { %1625 = vmatmul.msk.f32.gmra.mxu1 %vm365_vm9, %v1052_v1  ;;  %1631 = vmatmul.msk.f32.gmra.mxu0 %vm365_vm9, %v1303_v42 }
 0x3ec   : > { %v1078_v11 = vpop.f32.mrf.mxu1 }
 0x3ed   : > { %1361 = vrot.lane.b32.xlu0 %v1078_v11, %s1792_s23 }
 0x40f   : > { %v2279_v4 = vpop.f32.mrf.mxu3 }
 0x414   : > { %v1329_v5 = vpop.f32.mrf.mxu0 }
 0x415   : > { %1377 = vrot.lane.b32.xlu2 %v1329_v5, %s1790_s21 }
 0x417   : > { %v827_v6 = vpop.f32.mrf.mxu3 }
 0x418   : > { %1345 = vrot.lane.b32.xlu1 %v827_v6, %s1791_s22 }
 0x41f   : > { %v830_v7 = vpop.f32.mrf.mxu3 }
 0x420   : > { %1347 = vrot.lane.b32.xlu1 %v830_v7, %s1791_s22 }
 0x42e   : > { %v833_v44 = vpop.f32.mrf.mxu3 }
 0x42f   : > { %1349 = vrot.lane.b32.xlu1 %v833_v44, %s1791_s22 }
 0x436   : > { %v1081_v8 = vpop.f32.mrf.mxu1 }
 0x437   : > { %1363 = vrot.lane.b32.xlu0 %v1081_v8, %s1792_s23  ;;  %v1695_v8 = vld [vmem:[%s2370_s4] ss:$0 sm:$0xff] }
 0x43c   : > { %v836_v9 = vpop.f32.mrf.mxu3 }
 0x43d   : > { %1351 = vrot.lane.b32.xlu1 %v836_v9, %s1791_s22 }
 0x446   : > { %v1332_v10 = vpop.f32.mrf.mxu0 }
 0x447   : > { %1379 = vrot.lane.b32.xlu2 %v1332_v10, %s1790_s21 }
 0x448   : > { %v1084_v14 = vpop.f32.mrf.mxu1 }
 0x449   : > { %1365 = vrot.lane.b32.xlu0 %v1084_v14, %s1792_s23 }
 0x44e   : > { %v1335_v54 = vpop.f32.mrf.mxu0 }
 0x44f   : > { %1381 = vrot.lane.b32.xlu2 %v1335_v54, %s1790_s21 }
 0x456   : > { %v1087_v13 = vpop.f32.mrf.mxu1  ;;  %v1338_v22 = vpop.f32.mrf.mxu0 }
 0x457   : > { %1367 = vrot.lane.b32.xlu0 %v1087_v13, %s1792_s23  ;;  %1383 = vrot.lane.b32.xlu2 %v1338_v22, %s1790_s21 }
 0x45f   : > { %v1362_v29 = vpop.permute.xlu0 %1361 }
 0x46f   : > { %v1378_v30 = vpop.permute.xlu2 %1377 }
 0x48a   : > { %v1346_v28 = vpop.permute.xlu1 %1345 }
 0x48b   : > { %v1389_v20 = vsel %vm365_vm9, %v572_v2, %v1346_v28 }
 0x48c   : > { %v1393_v27 = vsel %vm237_vm0, %v1389_v20, %v1362_v29 }
 0x48d   : > { %v1398_v31 = vsel %vm1397_vm3, %v1393_v27, %v1378_v30 }
 0x48e   : > { %1632 = vmatmul.msk.f32.vlgmr.msrb.gmra.mxu2 %vm1414_vm4, %v1398_v31 }
 0x492   : > { %v1348_v23 = vpop.permute.xlu1 %1347 }
 0x493   : > { %v1390_v40 = vsel %vm365_vm9, %v575_v3, %v1348_v23 }
 0x4a1   : > { %v1380_v32 = vpop.permute.xlu2 %1379  ;;  %v1350_v38 = vpop.permute.xlu1 %1349 }
 0x4a2   : > { %v1391_v39 = vsel %vm365_vm9, %v578_v58, %v1350_v38 }
 0x4a9   : > { %v1364_v34 = vpop.permute.xlu0 %1363  ;;  %v1382_v15 = vpop.permute.xlu2 %1381 }
 0x4aa   : > { %v1394_v36 = vsel %vm237_vm0, %v1390_v40, %v1364_v34 }
 0x4ab   : > { %v1399_v37 = vsel %vm1397_vm3, %v1394_v36, %v1380_v32 }
 0x4ac   : > { %1633 = vmatmul.msk.f32.gmra.mxu2 %vm1414_vm4, %v1399_v37 }
 0x4af   : > { %v1352_v51 = vpop.permute.xlu1 %1351 }
 0x4b0   : > { %v1392_v52 = vsel %vm365_vm9, %v2279_v4, %v1352_v51 }
 0x4b1   : > { %v1384_v41 = vpop.permute.xlu2 %1383 }
 0x4bb   : > { %v1366_v46 = vpop.permute.xlu0 %1365 }
 0x4bc   : > { %v1395_v33 = vsel %vm237_vm0, %v1391_v39, %v1366_v46 }
 0x4bd   : > { %v1400_v50 = vsel %vm1397_vm3, %v1395_v33, %v1382_v15 }
 0x4be   : > { %1634 = vmatmul.msk.f32.gmra.mxu2 %vm1414_vm4, %v1400_v50 }
 0x4c9   : > { %v1368_v43 = vpop.permute.xlu0 %1367 }
 0x4ca   : > { %v1396_v26 = vsel %vm237_vm0, %v1392_v52, %v1368_v43 }
 0x4cb   : > { %v1401_v49 = vsel %vm1397_vm3, %v1396_v26, %v1384_v41 }
 0x4cc   : > { %1635 = vmatmul.msk.f32.gmra.mxu2 %vm1414_vm4, %v1401_v49 }
 0x511   : > { %v1444_v55 = vpop.f32.mrf.mxu2 }
 0x512   : > { %v1445_v57 = vadd.f32 %v1694_v48, %v1444_v55 }
 0x514   : > { %v1456_v45 = vmul.f32 %v1445_v57, %v1445_v57 }
 0x516   : > { %v1460_v59 = vsel %vm237_vm0, %v1456_v45, 0.0 }
 0x517   : > { %1461 = vadd.xlane.f32.xlu1 %v1460_v59 }
 0x52f   : > { %v1447_v47 = vpop.f32.mrf.mxu2 }
 0x530   : > { %v1448_v60 = vadd.f32 %v1694_v48, %v1447_v47 }
 0x532   : > { %v1457_v61 = vmul.f32 %v1448_v60, %v1448_v60 }
 0x534   : > { %v1463_v56 = vsel %vm237_vm0, %v1457_v61, 0.0 }
 0x535   : > { %1464 = vadd.xlane.f32.xlu0 %v1463_v56 }
 0x541   : > { %v1450_v62 = vpop.f32.mrf.mxu2 }
 0x542   : > { %v1451_v0 = vadd.f32 %v1694_v48, %v1450_v62 }
 0x544   : > { %v1458_v63 = vmul.f32 %v1451_v0, %v1451_v0 }
 0x546   : > { %v1466_v53 = vsel %vm237_vm0, %v1458_v63, 0.0 }
 0x547   : > { %1467 = vadd.xlane.f32.xlu2 %v1466_v53 }
 0x54f   : > { %v1453_v12 = vpop.f32.mrf.mxu2 }
 0x550   : > { %v2339_v1 = vadd.f32 %v1694_v48, %v1453_v12 }
 0x552   : > { %v1459_v42 = vmul.f32 %v2339_v1, %v2339_v1 }
 0x554   : > { %v1469_v11 = vsel %vm237_vm0, %v1459_v42, 0.0 }
 0x555   : > { %1470 = vadd.xlane.f32.xlu1 %v1469_v11 }
 0x58a   : > { %v1462_v2 = vpop.xlane.xlu1 %1461 }
 0x58b   : > { %v1472_v3 = vmax.f32 %v1462_v2, 1e-24 }
 0x58d   : > { %1770 = vrsqrt.f32 %v1472_v3  ;;  %vm1482_vm5 = vweird.f32 %v1472_v3 }
 0x593   : > { %v1771_v58 = vpop.eup %1770 }
 0x594   : > { %v1477_v4 = vmul.f32 %v1771_v58, %v1472_v3  ;;  %vm1483_vm9 = vweird.f32 %v1771_v58 }
 0x595   : > { %vm1484_vm6 = vmor %vm1482_vm5, %vm1483_vm9 }
 0x596   : > { %v1478_v5 = vmul.f32 %v1771_v58, %v1477_v4 }
 0x598   : > { %v1479_v6 = vmul.f32 0.5, %v1478_v5 }
 0x59a   : > { %v1480_v7 = vsub.f32 1.5, %v1479_v6 }
 0x59c   : > { %v1481_v44 = vmul.f32 %v1771_v58, %v1480_v7 }
 0x59e   : > { %v1485_v9 = vsel %vm1484_vm6, %v1771_v58, %v1481_v44 }
 0x59f   : > { %v1516_v10 = vmul.f32 %v1485_v9, %v1445_v57 }
 0x5a1   : > { %v1524_v14 = vmul.f32 %v1695_v8, %v1516_v10 }
 0x5a3   : > { %v1528_v54 = vmul.f32 5.656854, %v1524_v14 }
 0x5a5   : > { %1532 = vst.msk [vmem:[%s2352_s24] sm:$0xff] %vm237_vm0, %v1528_v54 }
 0x5a8   : > { %v1465_v18 = vpop.xlane.xlu0 %1464 }
 0x5a9   : > { %v1473_v19 = vmax.f32 %v1465_v18, 1e-24 }
 0x5ab   : > { %1772 = vrsqrt.f32 %v1473_v19  ;;  %vm1492_vm8 = vweird.f32 %v1473_v19 }
 0x5b1   : > { %v1773_v35 = vpop.eup %1772 }
 0x5b2   : > { %v1487_v17 = vmul.f32 %v1773_v35, %v1473_v19  ;;  %vm1493_vm7 = vweird.f32 %v1773_v35 }
 0x5b3   : > { %vm1494_vm10 = vmor %vm1492_vm8, %vm1493_vm7 }
 0x5b4   : > { %v1488_v21 = vmul.f32 %v1773_v35, %v1487_v17 }
 0x5b6   : > { %v1489_v13 = vmul.f32 0.5, %v1488_v21 }
 0x5b8   : > { %v1490_v22 = vsub.f32 1.5, %v1489_v13 }
 0x5ba   : > { %v1468_v16 = vpop.xlane.xlu2 %1467  ;;  %v1491_v24 = vmul.f32 %v1773_v35, %v1490_v22 }
 0x5bb   : > { %v1474_v25 = vmax.f32 %v1468_v16, 1e-24 }
 0x5bc   : > { %v1495_v28 = vsel %vm1494_vm10, %v1773_v35, %v1491_v24 }
 0x5bd   : > { %1774 = vrsqrt.f32 %v1474_v25  ;;  %v1517_v29 = vmul.f32 %v1495_v28, %v1448_v60  ;;  %vm1502_vm12 = vweird.f32 %v1474_v25 }
 0x5bf   : > { %v1525_v20 = vmul.f32 %v1695_v8, %v1517_v29 }
 0x5c1   : > { %v1529_v27 = vmul.f32 5.656854, %v1525_v20 }
 0x5c3   : > { %v1775_v30 = vpop.eup %1774  ;;  %1533 = vst.msk [vmem:[%s2352_s24 + $0x8] sm:$0xff] %vm237_vm0, %v1529_v27 }
 0x5c4   : > { %v1497_v31 = vmul.f32 %v1775_v30, %v1474_v25  ;;  %vm1503_vm11 = vweird.f32 %v1775_v30 }
 0x5c5   : > { %vm1504_vm13 = vmor %vm1502_vm12, %vm1503_vm11 }
 0x5c6   : > { %v1498_v23 = vmul.f32 %v1775_v30, %v1497_v31 }
 0x5c8   : > { %v1471_v40 = vpop.xlane.xlu1 %1470  ;;  %v1499_v34 = vmul.f32 0.5, %v1498_v23 }
 0x5c9   : > { %v1475_v32 = vmax.f32 %v1471_v40, 1e-24 }
 0x5ca   : > { %v1500_v36 = vsub.f32 1.5, %v1499_v34 }
 0x5cb   : > { %1776 = vrsqrt.f32 %v1475_v32  ;;  %vm1512_vm15 = vweird.f32 %v1475_v32 }
 0x5cc   : > { %v1501_v37 = vmul.f32 %v1775_v30, %v1500_v36 }
 0x5ce   : > { %v1505_v38 = vsel %vm1504_vm13, %v1775_v30, %v1501_v37 }
 0x5cf   : > { %v1518_v39 = vmul.f32 %v1505_v38, %v1451_v0 }
 0x5d1   : > { %v1777_v46 = vpop.eup %1776  ;;  %v1526_v15 = vmul.f32 %v1695_v8, %v1518_v39 }
 0x5d2   : > { %v1507_v33 = vmul.f32 %v1777_v46, %v1475_v32  ;;  %vm1513_vm14 = vweird.f32 %v1777_v46 }
 0x5d3   : > { %v1530_v50 = vmul.f32 5.656854, %v1526_v15  ;;  %vm1514_vm1 = vmor %vm1512_vm15, %vm1513_vm14 }
 0x5d4   : > { %v1508_v51 = vmul.f32 %v1777_v46, %v1507_v33 }
 0x5d5   : > { %1534 = vst.msk [vmem:[%s2352_s24 + $0x10] sm:$0xff] %vm237_vm0, %v1530_v50 }
 0x5d6   : > { %v1509_v52 = vmul.f32 0.5, %v1508_v51 }
 0x5d8   : > { %v1510_v43 = vsub.f32 1.5, %v1509_v52 }
 0x5da   : > { %v1511_v41 = vmul.f32 %v1777_v46, %v1510_v43 }
 0x5dc   : > { %v1515_v26 = vsel %vm1514_vm1, %v1777_v46, %v1511_v41 }
 0x5dd   : > { %v1519_v49 = vmul.f32 %v1515_v26, %v2339_v1 }
 0x5df   : > { %v1527_v48 = vmul.f32 %v1695_v8, %v1519_v49 }
 0x5e1   : > { %v1531_v55 = vmul.f32 5.656854, %v1527_v48 }
 0x5e3   : > { %1535 = vst.msk [vmem:[%s2352_s24 + $0x18] sm:$0xff] %vm237_vm0, %v1531_v55 }
 0x5e4 PF: > { %s15_s18 = sadd.s32 1, %s1784_s18  }
 0x5e5   : > { %p12_p4 = scmp.ge.s32.totalorder %s15_s18, 4  }
 0x5e7   :  { %14 = sbr.rel (!%p12_p4) target bundleno = 1 (0x1), region = 70 }

</bundles_post_ra>
